<compile_context>
chip_gen: v7x
topology: tpu7x:2x2x1
jax: 0.10.0
libtpu: 0.0.40
codegen_flags: <defaults>
</compile_context>

<pallas_src>
import jax
import jax.numpy as jnp
from jax.experimental import pallas as pl
from jax.experimental.pallas import tpu as pltpu


def _bigru_recurrence_kernel(len_ref, gx_ref, whh_ref, bhhn_ref, out_ref, h_ref):
    """One grid step = Tc GRU steps of one direction over one time chunk."""
    d = pl.program_id(0)                 # 0 = forward direction, 1 = backward
    c = pl.program_id(1)                 # chunk counter along the recurrence
    nc = pl.num_programs(1)
    Tc = gx_ref.shape[1]
    H = h_ref.shape[1]

    @pl.when(c == 0)                     # start of this direction's recurrence
    def _():
        h_ref[...] = jnp.zeros_like(h_ref)

    lengths = len_ref[...]               # (B, 1) int32 sequence lengths
    whh = whh_ref[0]                     # (H, 3H) hidden->gates weights (resident)
    bhh_n = bhhn_ref[0]                  # (1, H)  n-gate hidden bias (not foldable)

    # Time block this grid step covers: forward walks c, backward walks nc-1-c
    # (and reverses inside the chunk), so outputs land in natural time order.
    t_base = (c + d * (nc - 1 - 2 * c)) * Tc

    def step(i, h):
        local = i + d * (Tc - 1 - 2 * i)             # fwd: i      bwd: Tc-1-i
        t = t_base + local                           # global time index
        gx = gx_ref[0, pl.ds(local, 1)][0]           # (B, 3H) precomputed x-proj
        gh = jnp.dot(h, whh, preferred_element_type=jnp.float32)    # (B, 3H)
        r = jax.nn.sigmoid(gx[:, 0:H] + gh[:, 0:H])
        z = jax.nn.sigmoid(gx[:, H:2 * H] + gh[:, H:2 * H])
        n = jnp.tanh(gx[:, 2 * H:] + r * (gh[:, 2 * H:] + bhh_n))
        h_new = (1.0 - z) * n + z * h
        valid = lengths > t                          # packed-sequence mask (B, 1)
        out_ref[0, pl.ds(local, 1)] = (
            jnp.where(valid, h_new, 0.0)[None].astype(out_ref.dtype))
        return jnp.where(valid, h_new, h)            # freeze h past each length

    h_ref[...] = jax.lax.fori_loop(0, Tc, step, h_ref[...], unroll=True)


def bnrelu_rnn_forward(x, input_lengths, params, *, time_chunk=16):
    """x: (T, B, D) f32 (time-major), input_lengths: (B,). Returns (T, B, 2*H)."""
    T, B, D = x.shape
    H = params["whh_f"].shape[0]
    eps = 1e-5

    # ---- BatchNorm (eval) + ReLU + input projection, hoisted out of the loop ----
    scale = params["bn_gamma"] / jnp.sqrt(params["bn_var"] + eps)
    shift = params["bn_beta"] - params["bn_mean"] * scale
    x_act = jnp.maximum(x * scale + shift, 0.0)                        # (T, B, D)

    def fold_bias(bih, bhh):   # fold b_ih fully and the r/z columns of b_hh
        return bih + jnp.concatenate(
            [bhh[:, :2 * H], jnp.zeros((1, H), bhh.dtype)], axis=1)

    wih = jnp.stack([params["wih_f"], params["wih_b"]])                # (2, D, 3H)
    whh = jnp.stack([params["whh_f"], params["whh_b"]])                # (2, H, 3H)
    bias = jnp.stack([fold_bias(params["bih_f"], params["bhh_f"]),
                      fold_bias(params["bih_b"], params["bhh_b"])])    # (2, 1, 3H)
    bhh_n = jnp.stack([params["bhh_f"][:, 2 * H:],
                       params["bhh_b"][:, 2 * H:]])                    # (2, 1, H)

    # One MXU-shaped matmul (M = T*B) per direction instead of T tiny ones.
    gx = jnp.einsum("tbd,kdg->ktbg", x_act, wih,
                    precision=jax.lax.Precision.HIGHEST) + bias[:, None]  # (2,T,B,3H)

    # ---- pad time to a chunk multiple and batch to the f32 sublane count (8) ----
    Tc = max(1, min(time_chunk, T))
    nc = pl.cdiv(T, Tc)
    T_pad = nc * Tc
    B_pad = pl.cdiv(B, 8) * 8
    gx = jnp.pad(gx, ((0, 0), (0, T_pad - T), (0, B_pad - B), (0, 0)))
    lengths2d = jnp.pad(input_lengths.astype(jnp.int32),
                        (0, B_pad - B)).reshape(B_pad, 1)

    tb_map = lambda d, c: (d, c + d * (nc - 1 - 2 * c), 0, 0)

    vmem_est = (4 * (2 * Tc * B_pad * 4 * H                # dbl-buffered gx + out blocks
                     + 2 * (H * 3 * H + H + B_pad)         # whh / bhh_n / lengths buffers
                     + B_pad * H)                          # hidden-state scratch
                + (4 << 20))
    vmem_limit = int(min(max(vmem_est, 32 << 20), 64 << 20))

    out = pl.pallas_call(
        _bigru_recurrence_kernel,
        out_shape=jax.ShapeDtypeStruct((2, T_pad, B_pad, H), jnp.float32),
        grid=(2, nc),
        in_specs=[
            pl.BlockSpec((B_pad, 1), lambda d, c: (0, 0)),             # lengths
            pl.BlockSpec((1, Tc, B_pad, 3 * H), tb_map),               # gx chunk
            pl.BlockSpec((1, H, 3 * H), lambda d, c: (d, 0, 0)),       # W_hh[dir]
            pl.BlockSpec((1, 1, H), lambda d, c: (d, 0, 0)),           # b_hh_n[dir]
        ],
        out_specs=pl.BlockSpec((1, Tc, B_pad, H), tb_map),
        scratch_shapes=[pltpu.VMEM((B_pad, H), jnp.float32)],
        compiler_params=pltpu.CompilerParams(
            dimension_semantics=("parallel", "arbitrary"),
            vmem_limit_bytes=vmem_limit),
    )(lengths2d, gx, whh, bhh_n)

    # Un-pad and join direction halves (fwd | bwd) along the feature axis.
    # TODO(synk): with H % 128 == 0 the kernel could store straight into a
    #   lane-dense (T, B, 2H) output block (last-dim block index = direction)
    #   and skip this extra concat pass.
    return jnp.concatenate([out[0, :T, :B], out[1, :T, :B]], axis=-1)


# ----------------------------- pure-JAX reference -----------------------------
def _reference(x, input_lengths, params):
    T, B, D = x.shape
    H = params["whh_f"].shape[0]
    eps = 1e-5
    hi = jax.lax.Precision.HIGHEST
    scale = params["bn_gamma"] / jnp.sqrt(params["bn_var"] + eps)
    shift = params["bn_beta"] - params["bn_mean"] * scale
    xb = jnp.maximum(x * scale + shift, 0.0)

    def run_dir(x_seq, valid_seq, wih, whh, bih, bhh):
        def step(h, inp):
            xt, valid = inp
            gx = jnp.dot(xt, wih, precision=hi) + bih
            gh = jnp.dot(h, whh, precision=hi) + bhh
            r = jax.nn.sigmoid(gx[:, :H] + gh[:, :H])
            z = jax.nn.sigmoid(gx[:, H:2 * H] + gh[:, H:2 * H])
            n = jnp.tanh(gx[:, 2 * H:] + r * gh[:, 2 * H:])
            h_new = (1.0 - z) * n + z * h
            h = jnp.where(valid, h_new, h)
            return h, jnp.where(valid, h_new, 0.0)
        h0 = jnp.zeros((B, H), jnp.float32)
        _, outs = jax.lax.scan(step, h0, (x_seq, valid_seq))
        return outs

    tt = jnp.arange(T)[:, None, None]
    valid = (tt < input_lengths[None, :, None]).astype(bool)           # (T, B, 1)
    out_f = run_dir(xb, valid, params["wih_f"], params["whh_f"],
                    params["bih_f"], params["bhh_f"])
    out_b = run_dir(xb[::-1], valid[::-1], params["wih_b"], params["whh_b"],
                    params["bih_b"], params["bhh_b"])[::-1]
    return jnp.concatenate([out_f, out_b], axis=-1)


if __name__ == "__main__":
    T, B, D, H = 8, 2, 16, 32   # seq, batch, input_size, hidden_state_dim

    key = jax.random.PRNGKey(0)
    ks = jax.random.split(key, 16)

    params = dict(
        bn_gamma=1.0 + 0.1 * jax.random.normal(ks[0], (D,), jnp.float32),
        bn_beta=0.1 * jax.random.normal(ks[1], (D,), jnp.float32),
        bn_mean=0.1 * jax.random.normal(ks[2], (D,), jnp.float32),
        bn_var=jnp.abs(1.0 + 0.1 * jax.random.normal(ks[3], (D,), jnp.float32)),
        # GRU weights stored pre-transposed (in_dim, 3H), gate order [r, z, n].
        wih_f=0.1 * jax.random.normal(ks[4], (D, 3 * H), jnp.float32),
        whh_f=0.1 * jax.random.normal(ks[5], (H, 3 * H), jnp.float32),
        bih_f=0.1 * jax.random.normal(ks[6], (1, 3 * H), jnp.float32),
        bhh_f=0.1 * jax.random.normal(ks[7], (1, 3 * H), jnp.float32),
        wih_b=0.1 * jax.random.normal(ks[8], (D, 3 * H), jnp.float32),
        whh_b=0.1 * jax.random.normal(ks[9], (H, 3 * H), jnp.float32),
        bih_b=0.1 * jax.random.normal(ks[10], (1, 3 * H), jnp.float32),
        bhh_b=0.1 * jax.random.normal(ks[11], (1, 3 * H), jnp.float32),
    )

    x = jax.random.normal(ks[12], (T, B, D), jnp.float32)
    input_lengths = jnp.array([T, T - 3], dtype=jnp.int32)

    out = bnrelu_rnn_forward(x, input_lengths, params)
    out = jax.block_until_ready(out)

    ref = jax.block_until_ready(_reference(x, input_lengths, params))
    assert out.shape == (T, B, 2 * H), out.shape
    assert jnp.all(jnp.isfinite(out))
    err = float(jnp.max(jnp.abs(out - ref)))
    assert jnp.allclose(out, ref, atol=5e-4, rtol=5e-4), err

    print("KERNEL_OK")
</pallas_src>

<mosaic_0001>
module attributes {stable_mosaic.version = 11 : i64} {
  func.func @_bigru_recurrence_kernel(%arg0: i32, %arg1: i32, %arg2: memref<8x1xi32, #tpu.memory_space<vmem>>, %arg3: memref<1x8x8x96xf32, #tpu.memory_space<vmem>>, %arg4: memref<1x32x96xf32, #tpu.memory_space<vmem>>, %arg5: memref<1x1x32xf32, #tpu.memory_space<vmem>>, %arg6: memref<1x8x8x32xf32, #tpu.memory_space<vmem>>, %arg7: memref<8x32xf32, #tpu.memory_space<vmem>>) attributes {dimension_semantics = [#tpu.dimension_semantics<parallel>, #tpu.dimension_semantics<arbitrary>], iteration_bounds = array<i64: 2, 1>, scalar_prefetch = 0 : i64, scratch_operands = 1 : i64, tpu.core_type = #tpu.core_type<tc>, window_params = [{pipeline_mode = #tpu.pipeline_mode<synchronous>, transform_indices = @transform_0, window_bounds = array<i64: 8, 1>}, {transform_indices = @transform_1, window_bounds = array<i64: 1, 8, 8, 96>}, {transform_indices = @transform_2, window_bounds = array<i64: 1, 32, 96>}, {transform_indices = @transform_3, window_bounds = array<i64: 1, 1, 32>}, {transform_indices = @transform_4, window_bounds = array<i64: 1, 8, 8, 32>}]} {
    %c0_i32 = arith.constant 0 : i32
    %0 = arith.cmpi eq, %arg1, %c0_i32 : i32
    %1 = arith.extui %0 : i1 to i32
    %c0_i32_0 = arith.constant 0 : i32
    %2 = arith.cmpi ne, %1, %c0_i32_0 : i32
    scf.if %2 {
      %cst_119 = arith.constant 0.000000e+00 : f32
      %431 = vector.broadcast %cst_119 : f32 to vector<8x32xf32>
      %c0_120 = arith.constant 0 : index
      %c0_121 = arith.constant 0 : index
      %432 = vector.load %arg7[%c0_120, %c0_121] : memref<8x32xf32, #tpu.memory_space<vmem>>, vector<8x32xf32>
      tpu.vector_store %arg7[%c0_120, %c0_121], %431 {strides = array<i32>} : memref<8x32xf32, #tpu.memory_space<vmem>>, vector<8x32xf32>,
    } else {
    }
    %c0 = arith.constant 0 : index
    %c0_1 = arith.constant 0 : index
    %3 = vector.load %arg2[%c0, %c0_1] : memref<8x1xi32, #tpu.memory_space<vmem>>, vector<8x1xi32>
    %c0_2 = arith.constant 0 : index
    %c0_3 = arith.constant 0 : index
    %c0_4 = arith.constant 0 : index
    %4 = vector.load %arg4[%c0_2, %c0_3, %c0_4] : memref<1x32x96xf32, #tpu.memory_space<vmem>>, vector<1x32x96xf32>
    %5 = vector.shape_cast %4 : vector<1x32x96xf32> to vector<32x96xf32>
    %c0_5 = arith.constant 0 : index
    %c0_6 = arith.constant 0 : index
    %c0_7 = arith.constant 0 : index
    %6 = vector.load %arg5[%c0_5, %c0_6, %c0_7] : memref<1x1x32xf32, #tpu.memory_space<vmem>>, vector<1x1x32xf32>
    %7 = vector.shape_cast %6 : vector<1x1x32xf32> to vector<1x32xf32>
    %c2_i32 = arith.constant 2 : i32
    %8 = arith.muli %c2_i32, %arg1 : i32
    %c0_i32_8 = arith.constant 0 : i32
    %9 = arith.subi %c0_i32_8, %8 : i32
    %10 = arith.muli %arg0, %9 : i32
    %11 = arith.addi %arg1, %10 : i32
    %c8_i32 = arith.constant 8 : i32
    %12 = arith.muli %11, %c8_i32 : i32
    %c0_9 = arith.constant 0 : index
    %c0_10 = arith.constant 0 : index
    %13 = vector.load %arg7[%c0_9, %c0_10] : memref<8x32xf32, #tpu.memory_space<vmem>>, vector<8x32xf32>
    %c0_i32_11 = arith.constant 0 : i32
    %c2_i32_12 = arith.constant 2 : i32
    %14 = arith.muli %c2_i32_12, %c0_i32_11 : i32
    %c7_i32 = arith.constant 7 : i32
    %15 = arith.subi %c7_i32, %14 : i32
    %16 = arith.muli %arg0, %15 : i32
    %17 = arith.addi %c0_i32_11, %16 : i32
    %18 = arith.addi %12, %17 : i32
    %c0_13 = arith.constant 0 : index
    %19 = arith.index_cast %17 : i32 to index
    %c0_14 = arith.constant 0 : index
    %c0_15 = arith.constant 0 : index
    %20 = vector.load %arg3[%c0_13, %19, %c0_14, %c0_15] : memref<1x8x8x96xf32, #tpu.memory_space<vmem>>, vector<1x1x8x96xf32>
    %21 = vector.shape_cast %20 : vector<1x1x8x96xf32> to vector<1x8x96xf32>
    %22 = vector.shape_cast %21 : vector<1x8x96xf32> to vector<8x96xf32>
    %cst = arith.constant dense<0.000000e+00> : vector<8x96xf32>
    %23 = tpu.matmul %13, %5, %cst {dimension_numbers = #tpu.dot_dimension_numbers<[1], [0], [0], [1], [0, 0, 1, 1], [], []>} : vector<8x32xf32>, vector<32x96xf32>, vector<8x96xf32> -> vector<8x96xf32>
    %24 = vector.extract_strided_slice %22 {offsets = [0, 0], sizes = [8, 32], strides = [1, 1]} : vector<8x96xf32> to vector<8x32xf32>
    %25 = vector.extract_strided_slice %23 {offsets = [0, 0], sizes = [8, 32], strides = [1, 1]} : vector<8x96xf32> to vector<8x32xf32>
    %26 = arith.addf %24, %25 : vector<8x32xf32>
    %27 = arith.negf %26 : vector<8x32xf32>
    %28 = math.exp %27 : vector<8x32xf32>
    %cst_16 = arith.constant 1.000000e+00 : f32
    %29 = vector.broadcast %cst_16 : f32 to vector<8x32xf32>
    %30 = arith.addf %29, %28 : vector<8x32xf32>
    %31 = arith.divf %29, %30 : vector<8x32xf32>
    %32 = vector.extract_strided_slice %22 {offsets = [0, 32], sizes = [8, 32], strides = [1, 1]} : vector<8x96xf32> to vector<8x32xf32>
    %33 = vector.extract_strided_slice %23 {offsets = [0, 32], sizes = [8, 32], strides = [1, 1]} : vector<8x96xf32> to vector<8x32xf32>
    %34 = arith.addf %32, %33 : vector<8x32xf32>
    %35 = arith.negf %34 : vector<8x32xf32>
    %36 = math.exp %35 : vector<8x32xf32>
    %cst_17 = arith.constant 1.000000e+00 : f32
    %37 = vector.broadcast %cst_17 : f32 to vector<8x32xf32>
    %38 = arith.addf %37, %36 : vector<8x32xf32>
    %39 = arith.divf %37, %38 : vector<8x32xf32>
    %40 = vector.extract_strided_slice %22 {offsets = [0, 64], sizes = [8, 32], strides = [1, 1]} : vector<8x96xf32> to vector<8x32xf32>
    %41 = vector.extract_strided_slice %23 {offsets = [0, 64], sizes = [8, 32], strides = [1, 1]} : vector<8x96xf32> to vector<8x32xf32>
    %42 = vector.broadcast %7 : vector<1x32xf32> to vector<8x32xf32>
    %43 = arith.addf %41, %42 : vector<8x32xf32>
    %44 = arith.mulf %31, %43 : vector<8x32xf32>
    %45 = arith.addf %40, %44 : vector<8x32xf32>
    %46 = math.tanh %45 : vector<8x32xf32>
    %cst_18 = arith.constant 1.000000e+00 : f32
    %47 = vector.broadcast %cst_18 : f32 to vector<8x32xf32>
    %48 = arith.subf %47, %39 : vector<8x32xf32>
    %49 = arith.mulf %48, %46 : vector<8x32xf32>
    %50 = arith.mulf %39, %13 : vector<8x32xf32>
    %51 = arith.addf %49, %50 : vector<8x32xf32>
    %52 = vector.broadcast %18 : i32 to vector<8x1xi32>
    %53 = arith.cmpi sgt, %3, %52 : vector<8x1xi32>
    %cst_19 = arith.constant 0.000000e+00 : f32
    %54 = vector.shape_cast %53 : vector<8x1xi1> to vector<8x1xi1>
    %55 = vector.broadcast %54 : vector<8x1xi1> to vector<8x32xi1>
    %56 = vector.broadcast %cst_19 : f32 to vector<8x32xf32>
    %57 = arith.select %55, %51, %56 : vector<8x32xi1>, vector<8x32xf32>
    %58 = vector.shape_cast %57 : vector<8x32xf32> to vector<1x8x32xf32>
    %c0_20 = arith.constant 0 : index
    %59 = arith.index_cast %17 : i32 to index
    %c0_21 = arith.constant 0 : index
    %c0_22 = arith.constant 0 : index
    %60 = vector.load %arg6[%c0_20, %59, %c0_21, %c0_22] : memref<1x8x8x32xf32, #tpu.memory_space<vmem>>, vector<1x1x8x32xf32>
    %61 = vector.shape_cast %60 : vector<1x1x8x32xf32> to vector<1x8x32xf32>
    %62 = vector.shape_cast %58 : vector<1x8x32xf32> to vector<1x1x8x32xf32>
    tpu.vector_store %arg6[%c0_20, %59, %c0_21, %c0_22], %62 {strides = array<i32>} : memref<1x8x8x32xf32, #tpu.memory_space<vmem>>, vector<1x1x8x32xf32>,
    %63 = vector.shape_cast %53 : vector<8x1xi1> to vector<8x1xi1>
    %64 = vector.broadcast %63 : vector<8x1xi1> to vector<8x32xi1>
    %65 = arith.select %64, %51, %13 : vector<8x32xi1>, vector<8x32xf32>
    %c1_i32 = arith.constant 1 : i32
    %c2_i32_23 = arith.constant 2 : i32
    %66 = arith.muli %c2_i32_23, %c1_i32 : i32
    %c7_i32_24 = arith.constant 7 : i32
    %67 = arith.subi %c7_i32_24, %66 : i32
    %68 = arith.muli %arg0, %67 : i32
    %69 = arith.addi %c1_i32, %68 : i32
    %70 = arith.addi %12, %69 : i32
    %c0_25 = arith.constant 0 : index
    %71 = arith.index_cast %69 : i32 to index
    %c0_26 = arith.constant 0 : index
    %c0_27 = arith.constant 0 : index
    %72 = vector.load %arg3[%c0_25, %71, %c0_26, %c0_27] : memref<1x8x8x96xf32, #tpu.memory_space<vmem>>, vector<1x1x8x96xf32>
    %73 = vector.shape_cast %72 : vector<1x1x8x96xf32> to vector<1x8x96xf32>
    %74 = vector.shape_cast %73 : vector<1x8x96xf32> to vector<8x96xf32>
    %cst_28 = arith.constant dense<0.000000e+00> : vector<8x96xf32>
    %75 = tpu.matmul %65, %5, %cst_28 {dimension_numbers = #tpu.dot_dimension_numbers<[1], [0], [0], [1], [0, 0, 1, 1], [], []>} : vector<8x32xf32>, vector<32x96xf32>, vector<8x96xf32> -> vector<8x96xf32>
    %76 = vector.extract_strided_slice %74 {offsets = [0, 0], sizes = [8, 32], strides = [1, 1]} : vector<8x96xf32> to vector<8x32xf32>
    %77 = vector.extract_strided_slice %75 {offsets = [0, 0], sizes = [8, 32], strides = [1, 1]} : vector<8x96xf32> to vector<8x32xf32>
    %78 = arith.addf %76, %77 : vector<8x32xf32>
    %79 = arith.negf %78 : vector<8x32xf32>
    %80 = math.exp %79 : vector<8x32xf32>
    %cst_29 = arith.constant 1.000000e+00 : f32
    %81 = vector.broadcast %cst_29 : f32 to vector<8x32xf32>
    %82 = arith.addf %81, %80 : vector<8x32xf32>
    %83 = arith.divf %81, %82 : vector<8x32xf32>
    %84 = vector.extract_strided_slice %74 {offsets = [0, 32], sizes = [8, 32], strides = [1, 1]} : vector<8x96xf32> to vector<8x32xf32>
    %85 = vector.extract_strided_slice %75 {offsets = [0, 32], sizes = [8, 32], strides = [1, 1]} : vector<8x96xf32> to vector<8x32xf32>
    %86 = arith.addf %84, %85 : vector<8x32xf32>
    %87 = arith.negf %86 : vector<8x32xf32>
    %88 = math.exp %87 : vector<8x32xf32>
    %cst_30 = arith.constant 1.000000e+00 : f32
    %89 = vector.broadcast %cst_30 : f32 to vector<8x32xf32>
    %90 = arith.addf %89, %88 : vector<8x32xf32>
    %91 = arith.divf %89, %90 : vector<8x32xf32>
    %92 = vector.extract_strided_slice %74 {offsets = [0, 64], sizes = [8, 32], strides = [1, 1]} : vector<8x96xf32> to vector<8x32xf32>
    %93 = vector.extract_strided_slice %75 {offsets = [0, 64], sizes = [8, 32], strides = [1, 1]} : vector<8x96xf32> to vector<8x32xf32>
    %94 = vector.broadcast %7 : vector<1x32xf32> to vector<8x32xf32>
    %95 = arith.addf %93, %94 : vector<8x32xf32>
    %96 = arith.mulf %83, %95 : vector<8x32xf32>
    %97 = arith.addf %92, %96 : vector<8x32xf32>
    %98 = math.tanh %97 : vector<8x32xf32>
    %cst_31 = arith.constant 1.000000e+00 : f32
    %99 = vector.broadcast %cst_31 : f32 to vector<8x32xf32>
    %100 = arith.subf %99, %91 : vector<8x32xf32>
    %101 = arith.mulf %100, %98 : vector<8x32xf32>
    %102 = arith.mulf %91, %65 : vector<8x32xf32>
    %103 = arith.addf %101, %102 : vector<8x32xf32>
    %104 = vector.broadcast %70 : i32 to vector<8x1xi32>
    %105 = arith.cmpi sgt, %3, %104 : vector<8x1xi32>
    %cst_32 = arith.constant 0.000000e+00 : f32
    %106 = vector.shape_cast %105 : vector<8x1xi1> to vector<8x1xi1>
    %107 = vector.broadcast %106 : vector<8x1xi1> to vector<8x32xi1>
    %108 = vector.broadcast %cst_32 : f32 to vector<8x32xf32>
    %109 = arith.select %107, %103, %108 : vector<8x32xi1>, vector<8x32xf32>
    %110 = vector.shape_cast %109 : vector<8x32xf32> to vector<1x8x32xf32>
    %c0_33 = arith.constant 0 : index
    %111 = arith.index_cast %69 : i32 to index
    %c0_34 = arith.constant 0 : index
    %c0_35 = arith.constant 0 : index
    %112 = vector.load %arg6[%c0_33, %111, %c0_34, %c0_35] : memref<1x8x8x32xf32, #tpu.memory_space<vmem>>, vector<1x1x8x32xf32>
    %113 = vector.shape_cast %112 : vector<1x1x8x32xf32> to vector<1x8x32xf32>
    %114 = vector.shape_cast %110 : vector<1x8x32xf32> to vector<1x1x8x32xf32>
    tpu.vector_store %arg6[%c0_33, %111, %c0_34, %c0_35], %114 {strides = array<i32>} : memref<1x8x8x32xf32, #tpu.memory_space<vmem>>, vector<1x1x8x32xf32>,
    %115 = vector.shape_cast %105 : vector<8x1xi1> to vector<8x1xi1>
    %116 = vector.broadcast %115 : vector<8x1xi1> to vector<8x32xi1>
    %117 = arith.select %116, %103, %65 : vector<8x32xi1>, vector<8x32xf32>
    %c2_i32_36 = arith.constant 2 : i32
    %c2_i32_37 = arith.constant 2 : i32
    %118 = arith.muli %c2_i32_37, %c2_i32_36 : i32
    %c7_i32_38 = arith.constant 7 : i32
    %119 = arith.subi %c7_i32_38, %118 : i32
    %120 = arith.muli %arg0, %119 : i32
    %121 = arith.addi %c2_i32_36, %120 : i32
    %122 = arith.addi %12, %121 : i32
    %c0_39 = arith.constant 0 : index
    %123 = arith.index_cast %121 : i32 to index
    %c0_40 = arith.constant 0 : index
    %c0_41 = arith.constant 0 : index
    %124 = vector.load %arg3[%c0_39, %123, %c0_40, %c0_41] : memref<1x8x8x96xf32, #tpu.memory_space<vmem>>, vector<1x1x8x96xf32>
    %125 = vector.shape_cast %124 : vector<1x1x8x96xf32> to vector<1x8x96xf32>
    %126 = vector.shape_cast %125 : vector<1x8x96xf32> to vector<8x96xf32>
    %cst_42 = arith.constant dense<0.000000e+00> : vector<8x96xf32>
    %127 = tpu.matmul %117, %5, %cst_42 {dimension_numbers = #tpu.dot_dimension_numbers<[1], [0], [0], [1], [0, 0, 1, 1], [], []>} : vector<8x32xf32>, vector<32x96xf32>, vector<8x96xf32> -> vector<8x96xf32>
    %128 = vector.extract_strided_slice %126 {offsets = [0, 0], sizes = [8, 32], strides = [1, 1]} : vector<8x96xf32> to vector<8x32xf32>
    %129 = vector.extract_strided_slice %127 {offsets = [0, 0], sizes = [8, 32], strides = [1, 1]} : vector<8x96xf32> to vector<8x32xf32>
    %130 = arith.addf %128, %129 : vector<8x32xf32>
    %131 = arith.negf %130 : vector<8x32xf32>
    %132 = math.exp %131 : vector<8x32xf32>
    %cst_43 = arith.constant 1.000000e+00 : f32
    %133 = vector.broadcast %cst_43 : f32 to vector<8x32xf32>
    %134 = arith.addf %133, %132 : vector<8x32xf32>
    %135 = arith.divf %133, %134 : vector<8x32xf32>
    %136 = vector.extract_strided_slice %126 {offsets = [0, 32], sizes = [8, 32], strides = [1, 1]} : vector<8x96xf32> to vector<8x32xf32>
    %137 = vector.extract_strided_slice %127 {offsets = [0, 32], sizes = [8, 32], strides = [1, 1]} : vector<8x96xf32> to vector<8x32xf32>
    %138 = arith.addf %136, %137 : vector<8x32xf32>
    %139 = arith.negf %138 : vector<8x32xf32>
    %140 = math.exp %139 : vector<8x32xf32>
    %cst_44 = arith.constant 1.000000e+00 : f32
    %141 = vector.broadcast %cst_44 : f32 to vector<8x32xf32>
    %142 = arith.addf %141, %140 : vector<8x32xf32>
    %143 = arith.divf %141, %142 : vector<8x32xf32>
    %144 = vector.extract_strided_slice %126 {offsets = [0, 64], sizes = [8, 32], strides = [1, 1]} : vector<8x96xf32> to vector<8x32xf32>
    %145 = vector.extract_strided_slice %127 {offsets = [0, 64], sizes = [8, 32], strides = [1, 1]} : vector<8x96xf32> to vector<8x32xf32>
    %146 = vector.broadcast %7 : vector<1x32xf32> to vector<8x32xf32>
    %147 = arith.addf %145, %146 : vector<8x32xf32>
    %148 = arith.mulf %135, %147 : vector<8x32xf32>
    %149 = arith.addf %144, %148 : vector<8x32xf32>
    %150 = math.tanh %149 : vector<8x32xf32>
    %cst_45 = arith.constant 1.000000e+00 : f32
    %151 = vector.broadcast %cst_45 : f32 to vector<8x32xf32>
    %152 = arith.subf %151, %143 : vector<8x32xf32>
    %153 = arith.mulf %152, %150 : vector<8x32xf32>
    %154 = arith.mulf %143, %117 : vector<8x32xf32>
    %155 = arith.addf %153, %154 : vector<8x32xf32>
    %156 = vector.broadcast %122 : i32 to vector<8x1xi32>
    %157 = arith.cmpi sgt, %3, %156 : vector<8x1xi32>
    %cst_46 = arith.constant 0.000000e+00 : f32
    %158 = vector.shape_cast %157 : vector<8x1xi1> to vector<8x1xi1>
    %159 = vector.broadcast %158 : vector<8x1xi1> to vector<8x32xi1>
    %160 = vector.broadcast %cst_46 : f32 to vector<8x32xf32>
    %161 = arith.select %159, %155, %160 : vector<8x32xi1>, vector<8x32xf32>
    %162 = vector.shape_cast %161 : vector<8x32xf32> to vector<1x8x32xf32>
    %c0_47 = arith.constant 0 : index
    %163 = arith.index_cast %121 : i32 to index
    %c0_48 = arith.constant 0 : index
    %c0_49 = arith.constant 0 : index
    %164 = vector.load %arg6[%c0_47, %163, %c0_48, %c0_49] : memref<1x8x8x32xf32, #tpu.memory_space<vmem>>, vector<1x1x8x32xf32>
    %165 = vector.shape_cast %164 : vector<1x1x8x32xf32> to vector<1x8x32xf32>
    %166 = vector.shape_cast %162 : vector<1x8x32xf32> to vector<1x1x8x32xf32>
    tpu.vector_store %arg6[%c0_47, %163, %c0_48, %c0_49], %166 {strides = array<i32>} : memref<1x8x8x32xf32, #tpu.memory_space<vmem>>, vector<1x1x8x32xf32>,
    %167 = vector.shape_cast %157 : vector<8x1xi1> to vector<8x1xi1>
    %168 = vector.broadcast %167 : vector<8x1xi1> to vector<8x32xi1>
    %169 = arith.select %168, %155, %117 : vector<8x32xi1>, vector<8x32xf32>
    %c3_i32 = arith.constant 3 : i32
    %c2_i32_50 = arith.constant 2 : i32
    %170 = arith.muli %c2_i32_50, %c3_i32 : i32
    %c7_i32_51 = arith.constant 7 : i32
    %171 = arith.subi %c7_i32_51, %170 : i32
    %172 = arith.muli %arg0, %171 : i32
    %173 = arith.addi %c3_i32, %172 : i32
    %174 = arith.addi %12, %173 : i32
    %c0_52 = arith.constant 0 : index
    %175 = arith.index_cast %173 : i32 to index
    %c0_53 = arith.constant 0 : index
    %c0_54 = arith.constant 0 : index
    %176 = vector.load %arg3[%c0_52, %175, %c0_53, %c0_54] : memref<1x8x8x96xf32, #tpu.memory_space<vmem>>, vector<1x1x8x96xf32>
    %177 = vector.shape_cast %176 : vector<1x1x8x96xf32> to vector<1x8x96xf32>
    %178 = vector.shape_cast %177 : vector<1x8x96xf32> to vector<8x96xf32>
    %cst_55 = arith.constant dense<0.000000e+00> : vector<8x96xf32>
    %179 = tpu.matmul %169, %5, %cst_55 {dimension_numbers = #tpu.dot_dimension_numbers<[1], [0], [0], [1], [0, 0, 1, 1], [], []>} : vector<8x32xf32>, vector<32x96xf32>, vector<8x96xf32> -> vector<8x96xf32>
    %180 = vector.extract_strided_slice %178 {offsets = [0, 0], sizes = [8, 32], strides = [1, 1]} : vector<8x96xf32> to vector<8x32xf32>
    %181 = vector.extract_strided_slice %179 {offsets = [0, 0], sizes = [8, 32], strides = [1, 1]} : vector<8x96xf32> to vector<8x32xf32>
    %182 = arith.addf %180, %181 : vector<8x32xf32>
    %183 = arith.negf %182 : vector<8x32xf32>
    %184 = math.exp %183 : vector<8x32xf32>
    %cst_56 = arith.constant 1.000000e+00 : f32
    %185 = vector.broadcast %cst_56 : f32 to vector<8x32xf32>
    %186 = arith.addf %185, %184 : vector<8x32xf32>
    %187 = arith.divf %185, %186 : vector<8x32xf32>
    %188 = vector.extract_strided_slice %178 {offsets = [0, 32], sizes = [8, 32], strides = [1, 1]} : vector<8x96xf32> to vector<8x32xf32>
    %189 = vector.extract_strided_slice %179 {offsets = [0, 32], sizes = [8, 32], strides = [1, 1]} : vector<8x96xf32> to vector<8x32xf32>
    %190 = arith.addf %188, %189 : vector<8x32xf32>
    %191 = arith.negf %190 : vector<8x32xf32>
    %192 = math.exp %191 : vector<8x32xf32>
    %cst_57 = arith.constant 1.000000e+00 : f32
    %193 = vector.broadcast %cst_57 : f32 to vector<8x32xf32>
    %194 = arith.addf %193, %192 : vector<8x32xf32>
    %195 = arith.divf %193, %194 : vector<8x32xf32>
    %196 = vector.extract_strided_slice %178 {offsets = [0, 64], sizes = [8, 32], strides = [1, 1]} : vector<8x96xf32> to vector<8x32xf32>
    %197 = vector.extract_strided_slice %179 {offsets = [0, 64], sizes = [8, 32], strides = [1, 1]} : vector<8x96xf32> to vector<8x32xf32>
    %198 = vector.broadcast %7 : vector<1x32xf32> to vector<8x32xf32>
    %199 = arith.addf %197, %198 : vector<8x32xf32>
    %200 = arith.mulf %187, %199 : vector<8x32xf32>
    %201 = arith.addf %196, %200 : vector<8x32xf32>
    %202 = math.tanh %201 : vector<8x32xf32>
    %cst_58 = arith.constant 1.000000e+00 : f32
    %203 = vector.broadcast %cst_58 : f32 to vector<8x32xf32>
    %204 = arith.subf %203, %195 : vector<8x32xf32>
    %205 = arith.mulf %204, %202 : vector<8x32xf32>
    %206 = arith.mulf %195, %169 : vector<8x32xf32>
    %207 = arith.addf %205, %206 : vector<8x32xf32>
    %208 = vector.broadcast %174 : i32 to vector<8x1xi32>
    %209 = arith.cmpi sgt, %3, %208 : vector<8x1xi32>
    %cst_59 = arith.constant 0.000000e+00 : f32
    %210 = vector.shape_cast %209 : vector<8x1xi1> to vector<8x1xi1>
    %211 = vector.broadcast %210 : vector<8x1xi1> to vector<8x32xi1>
    %212 = vector.broadcast %cst_59 : f32 to vector<8x32xf32>
    %213 = arith.select %211, %207, %212 : vector<8x32xi1>, vector<8x32xf32>
    %214 = vector.shape_cast %213 : vector<8x32xf32> to vector<1x8x32xf32>
    %c0_60 = arith.constant 0 : index
    %215 = arith.index_cast %173 : i32 to index
    %c0_61 = arith.constant 0 : index
    %c0_62 = arith.constant 0 : index
    %216 = vector.load %arg6[%c0_60, %215, %c0_61, %c0_62] : memref<1x8x8x32xf32, #tpu.memory_space<vmem>>, vector<1x1x8x32xf32>
    %217 = vector.shape_cast %216 : vector<1x1x8x32xf32> to vector<1x8x32xf32>
    %218 = vector.shape_cast %214 : vector<1x8x32xf32> to vector<1x1x8x32xf32>
    tpu.vector_store %arg6[%c0_60, %215, %c0_61, %c0_62], %218 {strides = array<i32>} : memref<1x8x8x32xf32, #tpu.memory_space<vmem>>, vector<1x1x8x32xf32>,
    %219 = vector.shape_cast %209 : vector<8x1xi1> to vector<8x1xi1>
    %220 = vector.broadcast %219 : vector<8x1xi1> to vector<8x32xi1>
    %221 = arith.select %220, %207, %169 : vector<8x32xi1>, vector<8x32xf32>
    %c4_i32 = arith.constant 4 : i32
    %c2_i32_63 = arith.constant 2 : i32
    %222 = arith.muli %c2_i32_63, %c4_i32 : i32
    %c7_i32_64 = arith.constant 7 : i32
    %223 = arith.subi %c7_i32_64, %222 : i32
    %224 = arith.muli %arg0, %223 : i32
    %225 = arith.addi %c4_i32, %224 : i32
    %226 = arith.addi %12, %225 : i32
    %c0_65 = arith.constant 0 : index
    %227 = arith.index_cast %225 : i32 to index
    %c0_66 = arith.constant 0 : index
    %c0_67 = arith.constant 0 : index
    %228 = vector.load %arg3[%c0_65, %227, %c0_66, %c0_67] : memref<1x8x8x96xf32, #tpu.memory_space<vmem>>, vector<1x1x8x96xf32>
    %229 = vector.shape_cast %228 : vector<1x1x8x96xf32> to vector<1x8x96xf32>
    %230 = vector.shape_cast %229 : vector<1x8x96xf32> to vector<8x96xf32>
    %cst_68 = arith.constant dense<0.000000e+00> : vector<8x96xf32>
    %231 = tpu.matmul %221, %5, %cst_68 {dimension_numbers = #tpu.dot_dimension_numbers<[1], [0], [0], [1], [0, 0, 1, 1], [], []>} : vector<8x32xf32>, vector<32x96xf32>, vector<8x96xf32> -> vector<8x96xf32>
    %232 = vector.extract_strided_slice %230 {offsets = [0, 0], sizes = [8, 32], strides = [1, 1]} : vector<8x96xf32> to vector<8x32xf32>
    %233 = vector.extract_strided_slice %231 {offsets = [0, 0], sizes = [8, 32], strides = [1, 1]} : vector<8x96xf32> to vector<8x32xf32>
    %234 = arith.addf %232, %233 : vector<8x32xf32>
    %235 = arith.negf %234 : vector<8x32xf32>
    %236 = math.exp %235 : vector<8x32xf32>
    %cst_69 = arith.constant 1.000000e+00 : f32
    %237 = vector.broadcast %cst_69 : f32 to vector<8x32xf32>
    %238 = arith.addf %237, %236 : vector<8x32xf32>
    %239 = arith.divf %237, %238 : vector<8x32xf32>
    %240 = vector.extract_strided_slice %230 {offsets = [0, 32], sizes = [8, 32], strides = [1, 1]} : vector<8x96xf32> to vector<8x32xf32>
    %241 = vector.extract_strided_slice %231 {offsets = [0, 32], sizes = [8, 32], strides = [1, 1]} : vector<8x96xf32> to vector<8x32xf32>
    %242 = arith.addf %240, %241 : vector<8x32xf32>
    %243 = arith.negf %242 : vector<8x32xf32>
    %244 = math.exp %243 : vector<8x32xf32>
    %cst_70 = arith.constant 1.000000e+00 : f32
    %245 = vector.broadcast %cst_70 : f32 to vector<8x32xf32>
    %246 = arith.addf %245, %244 : vector<8x32xf32>
    %247 = arith.divf %245, %246 : vector<8x32xf32>
    %248 = vector.extract_strided_slice %230 {offsets = [0, 64], sizes = [8, 32], strides = [1, 1]} : vector<8x96xf32> to vector<8x32xf32>
    %249 = vector.extract_strided_slice %231 {offsets = [0, 64], sizes = [8, 32], strides = [1, 1]} : vector<8x96xf32> to vector<8x32xf32>
    %250 = vector.broadcast %7 : vector<1x32xf32> to vector<8x32xf32>
    %251 = arith.addf %249, %250 : vector<8x32xf32>
    %252 = arith.mulf %239, %251 : vector<8x32xf32>
    %253 = arith.addf %248, %252 : vector<8x32xf32>
    %254 = math.tanh %253 : vector<8x32xf32>
    %cst_71 = arith.constant 1.000000e+00 : f32
    %255 = vector.broadcast %cst_71 : f32 to vector<8x32xf32>
    %256 = arith.subf %255, %247 : vector<8x32xf32>
    %257 = arith.mulf %256, %254 : vector<8x32xf32>
    %258 = arith.mulf %247, %221 : vector<8x32xf32>
    %259 = arith.addf %257, %258 : vector<8x32xf32>
    %260 = vector.broadcast %226 : i32 to vector<8x1xi32>
    %261 = arith.cmpi sgt, %3, %260 : vector<8x1xi32>
    %cst_72 = arith.constant 0.000000e+00 : f32
    %262 = vector.shape_cast %261 : vector<8x1xi1> to vector<8x1xi1>
    %263 = vector.broadcast %262 : vector<8x1xi1> to vector<8x32xi1>
    %264 = vector.broadcast %cst_72 : f32 to vector<8x32xf32>
    %265 = arith.select %263, %259, %264 : vector<8x32xi1>, vector<8x32xf32>
    %266 = vector.shape_cast %265 : vector<8x32xf32> to vector<1x8x32xf32>
    %c0_73 = arith.constant 0 : index
    %267 = arith.index_cast %225 : i32 to index
    %c0_74 = arith.constant 0 : index
    %c0_75 = arith.constant 0 : index
    %268 = vector.load %arg6[%c0_73, %267, %c0_74, %c0_75] : memref<1x8x8x32xf32, #tpu.memory_space<vmem>>, vector<1x1x8x32xf32>
    %269 = vector.shape_cast %268 : vector<1x1x8x32xf32> to vector<1x8x32xf32>
    %270 = vector.shape_cast %266 : vector<1x8x32xf32> to vector<1x1x8x32xf32>
    tpu.vector_store %arg6[%c0_73, %267, %c0_74, %c0_75], %270 {strides = array<i32>} : memref<1x8x8x32xf32, #tpu.memory_space<vmem>>, vector<1x1x8x32xf32>,
    %271 = vector.shape_cast %261 : vector<8x1xi1> to vector<8x1xi1>
    %272 = vector.broadcast %271 : vector<8x1xi1> to vector<8x32xi1>
    %273 = arith.select %272, %259, %221 : vector<8x32xi1>, vector<8x32xf32>
    %c5_i32 = arith.constant 5 : i32
    %c2_i32_76 = arith.constant 2 : i32
    %274 = arith.muli %c2_i32_76, %c5_i32 : i32
    %c7_i32_77 = arith.constant 7 : i32
    %275 = arith.subi %c7_i32_77, %274 : i32
    %276 = arith.muli %arg0, %275 : i32
    %277 = arith.addi %c5_i32, %276 : i32
    %278 = arith.addi %12, %277 : i32
    %c0_78 = arith.constant 0 : index
    %279 = arith.index_cast %277 : i32 to index
    %c0_79 = arith.constant 0 : index
    %c0_80 = arith.constant 0 : index
    %280 = vector.load %arg3[%c0_78, %279, %c0_79, %c0_80] : memref<1x8x8x96xf32, #tpu.memory_space<vmem>>, vector<1x1x8x96xf32>
    %281 = vector.shape_cast %280 : vector<1x1x8x96xf32> to vector<1x8x96xf32>
    %282 = vector.shape_cast %281 : vector<1x8x96xf32> to vector<8x96xf32>
    %cst_81 = arith.constant dense<0.000000e+00> : vector<8x96xf32>
    %283 = tpu.matmul %273, %5, %cst_81 {dimension_numbers = #tpu.dot_dimension_numbers<[1], [0], [0], [1], [0, 0, 1, 1], [], []>} : vector<8x32xf32>, vector<32x96xf32>, vector<8x96xf32> -> vector<8x96xf32>
    %284 = vector.extract_strided_slice %282 {offsets = [0, 0], sizes = [8, 32], strides = [1, 1]} : vector<8x96xf32> to vector<8x32xf32>
    %285 = vector.extract_strided_slice %283 {offsets = [0, 0], sizes = [8, 32], strides = [1, 1]} : vector<8x96xf32> to vector<8x32xf32>
    %286 = arith.addf %284, %285 : vector<8x32xf32>
    %287 = arith.negf %286 : vector<8x32xf32>
    %288 = math.exp %287 : vector<8x32xf32>
    %cst_82 = arith.constant 1.000000e+00 : f32
    %289 = vector.broadcast %cst_82 : f32 to vector<8x32xf32>
    %290 = arith.addf %289, %288 : vector<8x32xf32>
    %291 = arith.divf %289, %290 : vector<8x32xf32>
    %292 = vector.extract_strided_slice %282 {offsets = [0, 32], sizes = [8, 32], strides = [1, 1]} : vector<8x96xf32> to vector<8x32xf32>
    %293 = vector.extract_strided_slice %283 {offsets = [0, 32], sizes = [8, 32], strides = [1, 1]} : vector<8x96xf32> to vector<8x32xf32>
    %294 = arith.addf %292, %293 : vector<8x32xf32>
    %295 = arith.negf %294 : vector<8x32xf32>
    %296 = math.exp %295 : vector<8x32xf32>
    %cst_83 = arith.constant 1.000000e+00 : f32
    %297 = vector.broadcast %cst_83 : f32 to vector<8x32xf32>
    %298 = arith.addf %297, %296 : vector<8x32xf32>
    %299 = arith.divf %297, %298 : vector<8x32xf32>
    %300 = vector.extract_strided_slice %282 {offsets = [0, 64], sizes = [8, 32], strides = [1, 1]} : vector<8x96xf32> to vector<8x32xf32>
    %301 = vector.extract_strided_slice %283 {offsets = [0, 64], sizes = [8, 32], strides = [1, 1]} : vector<8x96xf32> to vector<8x32xf32>
    %302 = vector.broadcast %7 : vector<1x32xf32> to vector<8x32xf32>
    %303 = arith.addf %301, %302 : vector<8x32xf32>
    %304 = arith.mulf %291, %303 : vector<8x32xf32>
    %305 = arith.addf %300, %304 : vector<8x32xf32>
    %306 = math.tanh %305 : vector<8x32xf32>
    %cst_84 = arith.constant 1.000000e+00 : f32
    %307 = vector.broadcast %cst_84 : f32 to vector<8x32xf32>
    %308 = arith.subf %307, %299 : vector<8x32xf32>
    %309 = arith.mulf %308, %306 : vector<8x32xf32>
    %310 = arith.mulf %299, %273 : vector<8x32xf32>
    %311 = arith.addf %309, %310 : vector<8x32xf32>
    %312 = vector.broadcast %278 : i32 to vector<8x1xi32>
    %313 = arith.cmpi sgt, %3, %312 : vector<8x1xi32>
    %cst_85 = arith.constant 0.000000e+00 : f32
    %314 = vector.shape_cast %313 : vector<8x1xi1> to vector<8x1xi1>
    %315 = vector.broadcast %314 : vector<8x1xi1> to vector<8x32xi1>
    %316 = vector.broadcast %cst_85 : f32 to vector<8x32xf32>
    %317 = arith.select %315, %311, %316 : vector<8x32xi1>, vector<8x32xf32>
    %318 = vector.shape_cast %317 : vector<8x32xf32> to vector<1x8x32xf32>
    %c0_86 = arith.constant 0 : index
    %319 = arith.index_cast %277 : i32 to index
    %c0_87 = arith.constant 0 : index
    %c0_88 = arith.constant 0 : index
    %320 = vector.load %arg6[%c0_86, %319, %c0_87, %c0_88] : memref<1x8x8x32xf32, #tpu.memory_space<vmem>>, vector<1x1x8x32xf32>
    %321 = vector.shape_cast %320 : vector<1x1x8x32xf32> to vector<1x8x32xf32>
    %322 = vector.shape_cast %318 : vector<1x8x32xf32> to vector<1x1x8x32xf32>
    tpu.vector_store %arg6[%c0_86, %319, %c0_87, %c0_88], %322 {strides = array<i32>} : memref<1x8x8x32xf32, #tpu.memory_space<vmem>>, vector<1x1x8x32xf32>,
    %323 = vector.shape_cast %313 : vector<8x1xi1> to vector<8x1xi1>
    %324 = vector.broadcast %323 : vector<8x1xi1> to vector<8x32xi1>
    %325 = arith.select %324, %311, %273 : vector<8x32xi1>, vector<8x32xf32>
    %c6_i32 = arith.constant 6 : i32
    %c2_i32_89 = arith.constant 2 : i32
    %326 = arith.muli %c2_i32_89, %c6_i32 : i32
    %c7_i32_90 = arith.constant 7 : i32
    %327 = arith.subi %c7_i32_90, %326 : i32
    %328 = arith.muli %arg0, %327 : i32
    %329 = arith.addi %c6_i32, %328 : i32
    %330 = arith.addi %12, %329 : i32
    %c0_91 = arith.constant 0 : index
    %331 = arith.index_cast %329 : i32 to index
    %c0_92 = arith.constant 0 : index
    %c0_93 = arith.constant 0 : index
    %332 = vector.load %arg3[%c0_91, %331, %c0_92, %c0_93] : memref<1x8x8x96xf32, #tpu.memory_space<vmem>>, vector<1x1x8x96xf32>
    %333 = vector.shape_cast %332 : vector<1x1x8x96xf32> to vector<1x8x96xf32>
    %334 = vector.shape_cast %333 : vector<1x8x96xf32> to vector<8x96xf32>
    %cst_94 = arith.constant dense<0.000000e+00> : vector<8x96xf32>
    %335 = tpu.matmul %325, %5, %cst_94 {dimension_numbers = #tpu.dot_dimension_numbers<[1], [0], [0], [1], [0, 0, 1, 1], [], []>} : vector<8x32xf32>, vector<32x96xf32>, vector<8x96xf32> -> vector<8x96xf32>
    %336 = vector.extract_strided_slice %334 {offsets = [0, 0], sizes = [8, 32], strides = [1, 1]} : vector<8x96xf32> to vector<8x32xf32>
    %337 = vector.extract_strided_slice %335 {offsets = [0, 0], sizes = [8, 32], strides = [1, 1]} : vector<8x96xf32> to vector<8x32xf32>
    %338 = arith.addf %336, %337 : vector<8x32xf32>
    %339 = arith.negf %338 : vector<8x32xf32>
    %340 = math.exp %339 : vector<8x32xf32>
    %cst_95 = arith.constant 1.000000e+00 : f32
    %341 = vector.broadcast %cst_95 : f32 to vector<8x32xf32>
    %342 = arith.addf %341, %340 : vector<8x32xf32>
    %343 = arith.divf %341, %342 : vector<8x32xf32>
    %344 = vector.extract_strided_slice %334 {offsets = [0, 32], sizes = [8, 32], strides = [1, 1]} : vector<8x96xf32> to vector<8x32xf32>
    %345 = vector.extract_strided_slice %335 {offsets = [0, 32], sizes = [8, 32], strides = [1, 1]} : vector<8x96xf32> to vector<8x32xf32>
    %346 = arith.addf %344, %345 : vector<8x32xf32>
    %347 = arith.negf %346 : vector<8x32xf32>
    %348 = math.exp %347 : vector<8x32xf32>
    %cst_96 = arith.constant 1.000000e+00 : f32
    %349 = vector.broadcast %cst_96 : f32 to vector<8x32xf32>
    %350 = arith.addf %349, %348 : vector<8x32xf32>
    %351 = arith.divf %349, %350 : vector<8x32xf32>
    %352 = vector.extract_strided_slice %334 {offsets = [0, 64], sizes = [8, 32], strides = [1, 1]} : vector<8x96xf32> to vector<8x32xf32>
    %353 = vector.extract_strided_slice %335 {offsets = [0, 64], sizes = [8, 32], strides = [1, 1]} : vector<8x96xf32> to vector<8x32xf32>
    %354 = vector.broadcast %7 : vector<1x32xf32> to vector<8x32xf32>
    %355 = arith.addf %353, %354 : vector<8x32xf32>
    %356 = arith.mulf %343, %355 : vector<8x32xf32>
    %357 = arith.addf %352, %356 : vector<8x32xf32>
    %358 = math.tanh %357 : vector<8x32xf32>
    %cst_97 = arith.constant 1.000000e+00 : f32
    %359 = vector.broadcast %cst_97 : f32 to vector<8x32xf32>
    %360 = arith.subf %359, %351 : vector<8x32xf32>
    %361 = arith.mulf %360, %358 : vector<8x32xf32>
    %362 = arith.mulf %351, %325 : vector<8x32xf32>
    %363 = arith.addf %361, %362 : vector<8x32xf32>
    %364 = vector.broadcast %330 : i32 to vector<8x1xi32>
    %365 = arith.cmpi sgt, %3, %364 : vector<8x1xi32>
    %cst_98 = arith.constant 0.000000e+00 : f32
    %366 = vector.shape_cast %365 : vector<8x1xi1> to vector<8x1xi1>
    %367 = vector.broadcast %366 : vector<8x1xi1> to vector<8x32xi1>
    %368 = vector.broadcast %cst_98 : f32 to vector<8x32xf32>
    %369 = arith.select %367, %363, %368 : vector<8x32xi1>, vector<8x32xf32>
    %370 = vector.shape_cast %369 : vector<8x32xf32> to vector<1x8x32xf32>
    %c0_99 = arith.constant 0 : index
    %371 = arith.index_cast %329 : i32 to index
    %c0_100 = arith.constant 0 : index
    %c0_101 = arith.constant 0 : index
    %372 = vector.load %arg6[%c0_99, %371, %c0_100, %c0_101] : memref<1x8x8x32xf32, #tpu.memory_space<vmem>>, vector<1x1x8x32xf32>
    %373 = vector.shape_cast %372 : vector<1x1x8x32xf32> to vector<1x8x32xf32>
    %374 = vector.shape_cast %370 : vector<1x8x32xf32> to vector<1x1x8x32xf32>
    tpu.vector_store %arg6[%c0_99, %371, %c0_100, %c0_101], %374 {strides = array<i32>} : memref<1x8x8x32xf32, #tpu.memory_space<vmem>>, vector<1x1x8x32xf32>,
    %375 = vector.shape_cast %365 : vector<8x1xi1> to vector<8x1xi1>
    %376 = vector.broadcast %375 : vector<8x1xi1> to vector<8x32xi1>
    %377 = arith.select %376, %363, %325 : vector<8x32xi1>, vector<8x32xf32>
    %c7_i32_102 = arith.constant 7 : i32
    %c2_i32_103 = arith.constant 2 : i32
    %378 = arith.muli %c2_i32_103, %c7_i32_102 : i32
    %c7_i32_104 = arith.constant 7 : i32
    %379 = arith.subi %c7_i32_104, %378 : i32
    %380 = arith.muli %arg0, %379 : i32
    %381 = arith.addi %c7_i32_102, %380 : i32
    %382 = arith.addi %12, %381 : i32
    %c0_105 = arith.constant 0 : index
    %383 = arith.index_cast %381 : i32 to index
    %c0_106 = arith.constant 0 : index
    %c0_107 = arith.constant 0 : index
    %384 = vector.load %arg3[%c0_105, %383, %c0_106, %c0_107] : memref<1x8x8x96xf32, #tpu.memory_space<vmem>>, vector<1x1x8x96xf32>
    %385 = vector.shape_cast %384 : vector<1x1x8x96xf32> to vector<1x8x96xf32>
    %386 = vector.shape_cast %385 : vector<1x8x96xf32> to vector<8x96xf32>
    %cst_108 = arith.constant dense<0.000000e+00> : vector<8x96xf32>
    %387 = tpu.matmul %377, %5, %cst_108 {dimension_numbers = #tpu.dot_dimension_numbers<[1], [0], [0], [1], [0, 0, 1, 1], [], []>} : vector<8x32xf32>, vector<32x96xf32>, vector<8x96xf32> -> vector<8x96xf32>
    %388 = vector.extract_strided_slice %386 {offsets = [0, 0], sizes = [8, 32], strides = [1, 1]} : vector<8x96xf32> to vector<8x32xf32>
    %389 = vector.extract_strided_slice %387 {offsets = [0, 0], sizes = [8, 32], strides = [1, 1]} : vector<8x96xf32> to vector<8x32xf32>
    %390 = arith.addf %388, %389 : vector<8x32xf32>
    %391 = arith.negf %390 : vector<8x32xf32>
    %392 = math.exp %391 : vector<8x32xf32>
    %cst_109 = arith.constant 1.000000e+00 : f32
    %393 = vector.broadcast %cst_109 : f32 to vector<8x32xf32>
    %394 = arith.addf %393, %392 : vector<8x32xf32>
    %395 = arith.divf %393, %394 : vector<8x32xf32>
    %396 = vector.extract_strided_slice %386 {offsets = [0, 32], sizes = [8, 32], strides = [1, 1]} : vector<8x96xf32> to vector<8x32xf32>
    %397 = vector.extract_strided_slice %387 {offsets = [0, 32], sizes = [8, 32], strides = [1, 1]} : vector<8x96xf32> to vector<8x32xf32>
    %398 = arith.addf %396, %397 : vector<8x32xf32>
    %399 = arith.negf %398 : vector<8x32xf32>
    %400 = math.exp %399 : vector<8x32xf32>
    %cst_110 = arith.constant 1.000000e+00 : f32
    %401 = vector.broadcast %cst_110 : f32 to vector<8x32xf32>
    %402 = arith.addf %401, %400 : vector<8x32xf32>
    %403 = arith.divf %401, %402 : vector<8x32xf32>
    %404 = vector.extract_strided_slice %386 {offsets = [0, 64], sizes = [8, 32], strides = [1, 1]} : vector<8x96xf32> to vector<8x32xf32>
    %405 = vector.extract_strided_slice %387 {offsets = [0, 64], sizes = [8, 32], strides = [1, 1]} : vector<8x96xf32> to vector<8x32xf32>
    %406 = vector.broadcast %7 : vector<1x32xf32> to vector<8x32xf32>
    %407 = arith.addf %405, %406 : vector<8x32xf32>
    %408 = arith.mulf %395, %407 : vector<8x32xf32>
    %409 = arith.addf %404, %408 : vector<8x32xf32>
    %410 = math.tanh %409 : vector<8x32xf32>
    %cst_111 = arith.constant 1.000000e+00 : f32
    %411 = vector.broadcast %cst_111 : f32 to vector<8x32xf32>
    %412 = arith.subf %411, %403 : vector<8x32xf32>
    %413 = arith.mulf %412, %410 : vector<8x32xf32>
    %414 = arith.mulf %403, %377 : vector<8x32xf32>
    %415 = arith.addf %413, %414 : vector<8x32xf32>
    %416 = vector.broadcast %382 : i32 to vector<8x1xi32>
    %417 = arith.cmpi sgt, %3, %416 : vector<8x1xi32>
    %cst_112 = arith.constant 0.000000e+00 : f32
    %418 = vector.shape_cast %417 : vector<8x1xi1> to vector<8x1xi1>
    %419 = vector.broadcast %418 : vector<8x1xi1> to vector<8x32xi1>
    %420 = vector.broadcast %cst_112 : f32 to vector<8x32xf32>
    %421 = arith.select %419, %415, %420 : vector<8x32xi1>, vector<8x32xf32>
    %422 = vector.shape_cast %421 : vector<8x32xf32> to vector<1x8x32xf32>
    %c0_113 = arith.constant 0 : index
    %423 = arith.index_cast %381 : i32 to index
    %c0_114 = arith.constant 0 : index
    %c0_115 = arith.constant 0 : index
    %424 = vector.load %arg6[%c0_113, %423, %c0_114, %c0_115] : memref<1x8x8x32xf32, #tpu.memory_space<vmem>>, vector<1x1x8x32xf32>
    %425 = vector.shape_cast %424 : vector<1x1x8x32xf32> to vector<1x8x32xf32>
    %426 = vector.shape_cast %422 : vector<1x8x32xf32> to vector<1x1x8x32xf32>
    tpu.vector_store %arg6[%c0_113, %423, %c0_114, %c0_115], %426 {strides = array<i32>} : memref<1x8x8x32xf32, #tpu.memory_space<vmem>>, vector<1x1x8x32xf32>,
    %427 = vector.shape_cast %417 : vector<8x1xi1> to vector<8x1xi1>
    %428 = vector.broadcast %427 : vector<8x1xi1> to vector<8x32xi1>
    %429 = arith.select %428, %415, %377 : vector<8x32xi1>, vector<8x32xf32>
    %c8_i32_116 = arith.constant 8 : i32
    %c0_117 = arith.constant 0 : index
    %c0_118 = arith.constant 0 : index
    %430 = vector.load %arg7[%c0_117, %c0_118] : memref<8x32xf32, #tpu.memory_space<vmem>>, vector<8x32xf32>
    tpu.vector_store %arg7[%c0_117, %c0_118], %429 {strides = array<i32>} : memref<8x32xf32, #tpu.memory_space<vmem>>, vector<8x32xf32>,
    return
  }
  func.func @transform_0(%arg0: i32, %arg1: i32) -> (i32, i32) {
    %c0_i32 = arith.constant 0 : i32
    %c0_i32_0 = arith.constant 0 : i32
    %c0_i32_1 = arith.constant 0 : i32
    return %c0_i32, %c0_i32_0 : i32, i32
  }
  func.func @transform_1(%arg0: i32, %arg1: i32) -> (i32, i32, i32, i32) {
    %c2_i32 = arith.constant 2 : i32
    %0 = arith.muli %c2_i32, %arg1 : i32
    %c0_i32 = arith.constant 0 : i32
    %1 = arith.subi %c0_i32, %0 : i32
    %2 = arith.muli %arg0, %1 : i32
    %3 = arith.addi %arg1, %2 : i32
    %c0_i32_0 = arith.constant 0 : i32
    %c0_i32_1 = arith.constant 0 : i32
    %c0_i32_2 = arith.constant 0 : i32
    return %arg0, %3, %c0_i32_0, %c0_i32_1 : i32, i32, i32, i32
  }
  func.func @transform_2(%arg0: i32, %arg1: i32) -> (i32, i32, i32) {
    %c0_i32 = arith.constant 0 : i32
    %c0_i32_0 = arith.constant 0 : i32
    %c0_i32_1 = arith.constant 0 : i32
    return %arg0, %c0_i32, %c0_i32_0 : i32, i32, i32
  }
  func.func @transform_3(%arg0: i32, %arg1: i32) -> (i32, i32, i32) {
    %c0_i32 = arith.constant 0 : i32
    %c0_i32_0 = arith.constant 0 : i32
    %c0_i32_1 = arith.constant 0 : i32
    return %arg0, %c0_i32, %c0_i32_0 : i32, i32, i32
  }
  func.func @transform_4(%arg0: i32, %arg1: i32) -> (i32, i32, i32, i32) {
    %c2_i32 = arith.constant 2 : i32
    %0 = arith.muli %c2_i32, %arg1 : i32
    %c0_i32 = arith.constant 0 : i32
    %1 = arith.subi %c0_i32, %0 : i32
    %2 = arith.muli %arg0, %1 : i32
    %3 = arith.addi %arg1, %2 : i32
    %c0_i32_0 = arith.constant 0 : i32
    %c0_i32_1 = arith.constant 0 : i32
    %c0_i32_2 = arith.constant 0 : i32
    return %arg0, %3, %c0_i32_0, %c0_i32_1 : i32, i32, i32, i32
  }
}

</mosaic_0001>

<bundles_post_ra>
// kernel: tpu_custom_call.1
= control target key start
LH: loop header
LB: loop body
LE: loop exit
PB: predicated region body
PF: predicated region fallthrough
CT: control target
= control target key end

     0   :  { %9 = vsyncpa [#allocation4], 0  ;;  %s2554_s0 = inlined_call_operand.vmem [shape: s32[8,1], index: 0, kind: input, shape index: {}]   ;;  %s2555_s1 = inlined_call_operand.hbm [shape: f32[2,8,8,96], index: 1, kind: input, shape index: {}]   ;;  %s2556_s2 = inlined_call_operand.hbm [shape: f32[2,32,96], index: 2, kind: input, shape index: {}]   ;;  %s2557_s3 = inlined_call_operand.vmem [shape: f32[2,1,32], index: 3, kind: input, shape index: {}]   ;;  %s2558_s4 = inlined_call_operand.hbm [shape: f32[2,8,8,32], index: 4, kind: output, shape index: {}]  }
   0x1   :  { %11 = vsyncpa [#allocation4 + $0x1], 0 }
   0x2   :  { %12 = vsyncpa [#allocation7], 0 }
   0x3   :  { %14 = vsyncpa [#allocation7 + $0x1], 0 }
   0x4   :  { %15 = vsyncpa [#allocation5], 0 }
   0x5   :  { %17 = vsyncpa [#allocation5 + $0x1], 0  ;;  %s2083_s15 = smov 0   ;;  %s2085_s16 = smov 0  }
   0x6   :  { %s2087_s17 = smov 0   ;;  %s2089_s18 = smov 0  }
   0x7   :  { %s2091_s19 = smov 0   ;;  %s2093_s20 = smov 0  }
   0x8 LB: > { %s1527_s21 = sadd.s32 4294967295, %s2042_s20   ;;  %s1528_s22 = sadd.s32 4294967294, %s2042_s20   ;;  %s2042_s20 = sphi %s2093_s20, %s23_s20   ;;  %s2038_s19 = sphi %s2091_s19, %s2578_s19   ;;  %s2034_s18 = sphi %s2089_s18, %s2577_s18   ;;  %s2030_s17 = sphi %s2087_s17, %s2576_s17   ;;  %s2026_s16 = sphi %s2085_s16, %s2575_s16   ;;  %s2022_s15 = sphi %s2083_s15, %s2574_s15  }
   0x9   : > { %s35_s23 = sadd.s32 1, %s2038_s19  ;;  %s73_s24 = sadd.s32 1, %s2030_s17 }
   0xa   : > { %p37_p0 = scmp.ge.s32.totalorder %s35_s23, 2  ;;  %p80_p1 = scmp.ne.s32.totalorder %s2030_s17, %s2026_s16 }
   0xb   : > { %p81_p2 = scmp.eq.s32.totalorder %s2042_s20, 0  ;;  %p86_p3 = scmp.ne.s32.totalorder %s2026_s16, %s2022_s15 }
   0xc   : > { %s2580_s23 = smov (%p37_p0, %s35_s23), 0  ;;  %p87_p5 = scmp.eq.s32.totalorder %s1527_s21, 0 }
   0xd   : > { %p2124_p4 = por %p81_p2, %p80_p1  ;;  %s68_s26 = ssub.s32 %s2038_s19, %s2580_s23 }
   0xe   : > { %p172_p6 = scmp.eq.s32.totalorder %s1527_s21, 1  ;;  %p71_p7 = scmp.eq.s32.totalorder %s68_s26, 0 }
   0xf   : > { %p2130_p8 = por %p87_p5, %p86_p3  ;;  %p178_p10 = scmp.eq.s32.totalorder %s1528_s22, 1 }
  0x10   : > { %p2134_p9 = por %p172_p6, %p80_p1  ;;  %p1785_p13 = scmp.lt.s32.totalorder %s2042_s20, 2 }
  0x11   : > { %s2563_s27 = scalar_select %p2130_p8, 1, 0 }
  0x12   : > { %s2564_s28 = scalar_select %p2134_p9, 1, 0 }
  0x13   : > { %s2139_s29 = scalar_select %p71_p7, %s2030_s17, %s73_s24  }
  0x14   : > { %p2141_p11 = por %p178_p10, %p86_p3  ;;  %s2148_s5 = sand.u32 1, %s2030_s17  }
  0x15   : > { %s1531_s6 = sshll.u32 %s2148_s5, 6  ;;  %s1589_s7 = sshll.u32 %s2038_s19, 10 }
  0x16   : > { %s2565_s30 = scalar_select %p2141_p11, 1, 0 }
  0x17   : > { %s2155_s10 = scalar_lea.hbm %s2555_s1, %s1589_s7  ;;  %s205_s11 = scalar_lea.vmem [#allocation3], %s1531_s6 }
  0x18   : > { %s218_s12 = sshll.u32 %s205_s11, 4  ;;  %p2161_p0 = pnand %p1785_p13, %p2124_p4  ;;  %s2157_s12 = int_to_ptr.vmem [resolvable:$true] %s218_s12 }
  0x19   : > { %s202_s14 = scalar_lea.sflag [#allocation4], %s2148_s5  ;;  %s1896_s21 = scalar_lea.hbm %s2155_s10, 1024 }
  0x1a   : > { %p1897_p2 = scmp.ne.s32.totalorder %s2155_s10, %s1896_s21  ;;  %p1898_p3 = pneg %p2161_p0 }
  0x1b   : > { %s1901_s25 = scalar_lea.hbm %s2555_s1, 2048  ;;  %p1902_p4 = scmp.lt.u32.totalorder %s2155_s10, %s2555_s1 }
  0x1c   : > { %p1899_p5 = pnand %p1898_p3, %p1897_p2  ;;  %p1903_p7 = scmp.lt.u32.totalorder %s1901_s25, %s1896_s21 }
  0x1d   : > { %p1905_p13 = scmp.lt.u32.totalorder %s1896_s21, %s2155_s10 }
  0x1e   : > { %p1900_p6 = pneg %p1899_p5  ;;  %p1904_p10 = por %p1903_p7, %p1902_p4 }
  0x20   : > { %p1906_p12 = por %p1905_p13, %p1904_p10 }
  0x22   : > { %p1907_p1 = pnand %p1906_p12, %p1900_p6 }
  0x24   : > { %1910 = shalt.err (!%p1907_p1)
}
  0x25   : > { %s1911_s7 = scalar_lea.vmem %s2157_s12, 1024  ;;  %s2044_s8 = smov [#allocation3]  }
  0x26   : > { %p1912_p2 = scmp.ne.s32.totalorder %s2157_s12, %s1911_s7  ;;  %s1916_s9 = sshll.u32 %s2044_s8, 4  ;;  %s1917_s9 = int_to_ptr.vmem [resolvable:$false] %s1916_s9 }
  0x27   : > { %s1918_s11 = scalar_lea.vmem %s1917_s9, 2048  ;;  %p1919_p9 = scmp.lt.s32.totalorder %s2157_s12, %s1917_s9 }
  0x28   : > { %p1914_p5 = pnand %p1912_p2, %p1898_p3  ;;  %p1920_p4 = scmp.lt.s32.totalorder %s1918_s11, %s1911_s7 }
  0x2a   : > { %p1915_p11 = pneg %p1914_p5  ;;  %p1921_p7 = por %p1920_p4, %p1919_p9 }
  0x2c   : > { %p1922_p10 = pnand %p1921_p7, %p1915_p11 }
  0x2e   : > { %1925 = shalt.err (!%p1922_p10)
}
  0x2f   : > { %s2560_s21 = smov 128   ;;  %s2046_s22 = smov 8  }
  0x30   : > { %1777 = dma.hbm_to_vmem [thread:$0]  (!%p2161_p0), %s2155_s10, 1024, %s2157_s12, %s202_s14, %s2560_s21, %s2560_s21, %s2046_s22  }
  0x31   : > { %p253_p9 = scmp.lt.s32.totalorder %s2042_s20, 3  ;;  %s1534_s24 = sshll.u32 %s2148_s5, 5 }
  0x32   : > { %s1590_s25 = sshll.u32 %s2038_s19, 9  ;;  %p2567_p11 = scmp.ge.s32.totalorder %s2042_s20, 1 }
  0x33   : > { %s2209_s8 = scalar_lea.hbm %s2556_s2, %s1590_s25  ;;  %s232_s9 = scalar_lea.vmem [#allocation6], %s1534_s24 }
  0x34   : > { %p2202_p12 = pnand %p2567_p11, %p253_p9  ;;  %s239_s11 = sshll.u32 %s232_s9, 4  ;;  %s2211_s11 = int_to_ptr.vmem [resolvable:$true] %s239_s11 }
  0x35   : > { %s229_s10 = scalar_lea.sflag [#allocation7], %s2148_s5  ;;  %s1926_s12 = scalar_lea.hbm %s2209_s8, 512 }
  0x36   : > { %p1927_p1 = scmp.ne.s32.totalorder %s2209_s8, %s1926_s12  ;;  %s1931_s25 = scalar_lea.hbm %s2556_s2, 1024 }
  0x37   : > { %p1932_p2 = scmp.lt.u32.totalorder %s2209_s8, %s2556_s2  ;;  %p1933_p5 = scmp.lt.u32.totalorder %s1931_s25, %s1926_s12 }
  0x38   : > { %p1929_p6 = pnand %p1927_p1, %p1898_p3  ;;  %p1935_p7 = scmp.lt.u32.totalorder %s1926_s12, %s2209_s8 }
  0x39   : > { %p1934_p4 = por %p1933_p5, %p1932_p2 }
  0x3a   : > { %p1930_p13 = pneg %p1929_p6 }
  0x3b   : > { %p1936_p10 = por %p1935_p7, %p1934_p4 }
  0x3d   : > { %p1937_p9 = pnand %p1936_p10, %p1930_p13 }
  0x3f   : > { %1940 = shalt.err (!%p1937_p9)
}
  0x40   : > { %s1941_s24 = scalar_lea.vmem %s2211_s11, 512  ;;  %s2047_s21 = smov [#allocation6]  }
  0x41   : > { %p1942_p11 = scmp.ne.s32.totalorder %s2211_s11, %s1941_s24  ;;  %s1946_s9 = sshll.u32 %s2047_s21, 4  ;;  %s1947_s9 = int_to_ptr.vmem [resolvable:$false] %s1946_s9 }
  0x42   : > { %s1948_s14 = scalar_lea.vmem %s1947_s9, 1024  ;;  %p1949_p8 = scmp.lt.s32.totalorder %s2211_s11, %s1947_s9 }
  0x43   : > { %p1944_p1 = pnand %p1942_p11, %p1898_p3  ;;  %p1950_p2 = scmp.lt.s32.totalorder %s1948_s14, %s1941_s24 }
  0x45   : > { %p1945_p6 = pneg %p1944_p1  ;;  %p1951_p5 = por %p1950_p2, %p1949_p8 }
  0x47   : > { %p1952_p4 = pnand %p1951_p5, %p1945_p6 }
  0x49   : > { %1955 = shalt.err (!%p1952_p4)
}
  0x4a   : > { %s2569_s12 = smov 128   ;;  %257 = sbr.rel (%p2202_p12) target bundleno = 5663 (0x161f), region = 36 }
  0x4b   : > { %1780 = dma.hbm_to_vmem [thread:$0]  (!%p2161_p0), %s2209_s8, 512, %s2211_s11, %s229_s10, %s2569_s12, %s2569_s12, %s2046_s22  }
  0x4c   : > { %s2245_s25 = sand.u32 (!%p2202_p12), 1, %s2026_s16   ;;  %p2570_p8 = scmp.ne.s32.totalorder (!%p2202_p12), %s2563_s27, 0 }
  0x4d   : > { %s1538_s6 = sshll.u32 (!%p2202_p12), %s2245_s25, 6  ;;  %s260_s13 = scalar_lea.sflag (!%p2202_p12), [#allocation4], %s2245_s25 }
  0x4e   : > { %s2251_s7 = scalar_lea.vmem (!%p2202_p12), [#allocation3], %s1538_s6 }
  0x51   : > { %2009 = dma.done.wait (%p2570_p8), %s260_s13, 1024  }
  0x52   : > { %2011 = vsyncadd (%p2570_p8), %s260_s13, 4294966272  ;;  %s1539_s5 = sshll.u32 %s2245_s25, 5  ;;  %s269_s22 = scalar_lea.sflag [#allocation7], %s2245_s25 }
  0x53   : > { %s272_s26 = scalar_lea.vmem [#allocation6], %s1539_s5 }
  0x54   : > { %2013 = dma.done.wait (%p2570_p8), %s269_s22, 512  }
  0x55   : > { %2015 = vsyncadd (%p2570_p8), %s269_s22, 4294966784  ;;  %vm322_vm0 = vcmask 261120   ;;  %p310_p0 = scmp.lt.s32.totalorder %s2034_s18, 1  ;;  %v2048_v0 = vmov 0.0|0.0   ;;  %vm2049_vm1 = vmmov 0   ;;  %v2050_v1 = vmov 0.0  }
  0x56   : > { %1720 = vmatprep.subr.bf16.mxu0 %v2048_v0  ;;  %1640 = vmatprep.mubr.msk.f32.mxu0 %vm2049_vm1, %v2050_v1  ;;  %323 = vst.msk [vmem:[#allocation2] sm:$0xff] %vm322_vm0, %v2050_v1  ;;  %v325_v2 = vld [vmem:[%s272_s26] sm:$0xff]  ;;  %v326_v3 = vld [vmem:[%s272_s26 + $0x8] sm:$0xff]  ;;  %v327_v4 = vld [vmem:[%s272_s26 + $0x10] sm:$0xff]  ;;  %s2051_s24 = smov 64   ;;  %v2052_v10 = vmov 0  }
  0x57   : > { %s311_s8 = scalar_select %p310_p0, %s2034_s18, 1  ;;  %1726 = vmatprep.subr.bf16.mxu1 %v2048_v0  ;;  %1651 = vmatprep.mubr.msk.f32.mxu1 %vm2049_vm1, %v2050_v1  ;;  %v2276_v5 = vpack.c.bf16 %v326_v3, %v325_v2  ;;  %v328_v6 = vld [vmem:[%s272_s26 + $0x18] sm:$0xff]  ;;  %v2310_v20 = vld [vmem:[%s2554_s0] sm:$0xff] }
  0x58   : > { %v2280_v8 = vpack.c.bf16 %v328_v6, %v327_v4  ;;  %1846 = vset.pattern.permute.xlu1 %v2052_v10  ;;  %1847 = vset.pattern.permute.xlu0 %v2052_v10  ;;  %s1541_s21 = smul.u32 56, %s2034_s18  ;;  %s2053_s5 = smov 32  }
  0x59   : > { %s312_s10 = scalar_lea.vmem %s2557_s3, %s311_s8  ;;  %1722 = vmatpush3.bf16.msra.mxu0 %v2276_v5  ;;  %1728 = vmatpush3.bf16.msra.mxu1 %v2276_v5  ;;  %s336_s14 = smul.u32 7, %s2034_s18 }
  0x5a   : > { %v1544_v7 = vld [vmem:[%s312_s10] ss:$0 sm:$0xff]  ;;  %1723 = vmatprep.subr.bf16.mxu0 %v2048_v0  ;;  %1729 = vmatprep.subr.bf16.mxu1 %v2048_v0  ;;  %s339_s9 = scalar_lea.vmem %s2251_s7, %s1541_s21 [#allocation3]  ;;  %s2054_s22 = smov 96  }
  0x5b   : > { %427 = vrot.lane.b32.xlu0 %v1544_v7, %s2051_s24  ;;  %v340_v15 = vld [vmem:[%s339_s9] sm:$0xff]  ;;  %v453_v21 = vstv %s336_s14  ;;  %s468_s26 = smul.u32 5, %s2034_s18  ;;  %s714_s13 = sadd.s32 3, %s2034_s18 }
  0x5c   : > { %vm454_vm2 = vcmp.gt.s32.totalorder %v2310_v20, %v453_v21  ;;  %s1545_s27 = smul.u32 40, %s2034_s18  ;;  %p2571_p12 = scmp.ne.s32.totalorder %s2564_s28, 0 }
  0x5d   : > { %1725 = vmatpush3.bf16.msra.mxu0 %v2280_v8  ;;  %v335_v9 = vld [vmem:[#allocation2] sm:$0xff]  ;;  %1731 = vmatpush3.bf16.msra.mxu1 %v2280_v8  ;;  %v455_v25 = vsel %vm454_vm2, 1, %v2052_v10  ;;  %s469_s8 = sadd.s32 1, %s468_s26  ;;  %s1551_s10 = smul.u32 24, %s2034_s18 }
  0x5e   : > { %1732 = vmatprep.subr.bf16.mxu0 %v2048_v0  ;;  %1738 = vmatprep.subr.bf16.mxu1 %v2048_v0  ;;  %v576_v39 = vstv %s469_s8  ;;  %s1420_s11 = scalar_lea.vmem %s2251_s7, %s1545_s27 [#allocation3]  ;;  %s591_s14 = smul.u32 3, %s2034_s18 }
  0x5f   : > { %vm577_vm4 = vcmp.gt.s32.totalorder %v2310_v20, %v576_v39  ;;  %v1546_v44 = vld [vmem:[%s1420_s11 + $0x8] sm:$0xff]  ;;  %s1428_s9 = scalar_lea.vmem %s2251_s7, %s1551_s10 [#allocation3]  ;;  %s836_s8 = ssub.s32 4, %s2034_s18 }
  0x60   : > { %1641 = vmatmul.mubr.msk.f32.vlgmr.msra.gmra.mrb[0].mxu0 %vm322_vm0, %v335_v9  ;;  %v578_v43 = vsel %vm577_vm4, 1, %v2052_v10  ;;  %v1552_v6 = vld [vmem:[%s1428_s9 + $0x10] sm:$0xff]  ;;  %s592_s12 = sadd.s32 2, %s591_s14  ;;  %s2393_s11 = sshll.u32 %s836_s8, 3 }
  0x61   : > { %1734 = vmatpush3.bf16.msra.mxu0 %v2276_v5  ;;  %1662 = vmatprep.mubr.msk.f32.mxu0 %vm2049_vm1, %v2050_v1  ;;  %s839_s9 = scalar_lea.vmem %s2251_s7, %s2393_s11 [#allocation3]  ;;  %s958_s14 = smul.u32 4294967293, %s2034_s18 }
  0x62   : > { %1735 = vmatprep.subr.bf16.mxu0 %v2048_v0 }
  0x65   : > { %1737 = vmatpush3.bf16.msra.mxu0 %v2280_v8 }
  0x66   : > { %1744 = vmatprep.subr.bf16.mxu0 %v2048_v0 }
  0xcd   : > { %v2298_v11 = vpop.permute.xlu0 %427 }
 0x133   : > { %v411_v12 = vpop.f32.mrb[0].mxu0 }
 0x134   : > { %v430_v13 = vadd.f32 %v2298_v11, %v411_v12  ;;  %v1642_v14 = vpop.f32.mrb[1].mxu0  ;;  %v415_v16 = vadd.f32 %v411_v12, %v340_v15 }
 0x135   : > { %v699_v14 = vstv %s592_s12  ;;  %s959_s12 = sadd.s32 5, %s958_s14  ;;  %s1572_s14 = smul.u32 4294967256, %s2034_s18 }
 0x136   : > { %432 = vrot.lane.b32.xlu0 %v430_v13, %s2051_s24  ;;  %v1543_v17 = vmul.f32 -1.442695, %v415_v16  ;;  %vm700_vm6 = vcmp.gt.s32.totalorder %v2310_v20, %v699_v14 }
 0x138   : > { %1848 = vpow2.f32 %v1543_v17 }
 0x142   : > { %v1849_v18 = vpop.eup %1848 }
 0x143   : > { %v419_v19 = vadd.f32 1.0, %v1849_v18 }
 0x145   : > { %1850 = vrcp.f32 %v419_v19 }
 0x14f   : > { %v1851_v22 = vpop.eup %1850 }
 0x150   : > { %v442_v31 = vsub.f32 1.0, %v1851_v22 }
 0x1a8   : > { %v433_v23 = vpop.permute.xlu0 %432 }
 0x1a9   : > { %v435_v24 = vmul.f32 %v1851_v22, %v433_v23 }
 0x1ab   : > { %437 = vrot.lane.b32.xlu1 %v435_v24, %s2051_s24 }
 0x1af   : > { %457 = vperm.xlu1 %1846, %v455_v25  }
 0x1b3   : > { %448 = vrot.lane.b32.xlu1 %v335_v9, %s2053_s5  ;;  %s1557_s5 = sshll.u32 %s2034_s18, 3 }
 0x1b4   : > { %s1435_s26 = scalar_lea.vmem %s2251_s7, %s1557_s5 [#allocation3] }
 0x21d   : > { %v438_v26 = vpop.permute.xlu1 %437 }
 0x21e   : > { %v440_v27 = vadd.f32 %v438_v26, %v340_v15  ;;  %v701_v15 = vsel %vm700_vm6, 1, %v2052_v10 }
 0x220   : > { %1852 = vtanh.f32 %v440_v27 }
 0x22a   : > { %v1853_v28 = vpop.eup %1852 }
 0x22b   : > { %444 = vrot.lane.b32.xlu0 %v1853_v28, %s2054_s22 }
 0x22e   : > { %v458_v29 = vpop.permute.xlu1 %457 }
 0x22f   : > { %vm459_vm3 = vcmp.eq.s32.totalorder %v458_v29, 1 }
 0x232   : > { %v449_v30 = vpop.permute.xlu1 %448 }
 0x233   : > { %v451_v33 = vmul.f32 %v1851_v22, %v449_v30 }
 0x29d   : > { %v445_v32 = vpop.permute.xlu0 %444 }
 0x29e   : > { %v447_v34 = vmul.f32 %v445_v32, %v442_v31  ;;  %v821_v32 = vstv %s714_s13  ;;  %s1566_s13 = smul.u32 4294967272, %s2034_s18 }
 0x29f   : > { %vm822_vm8 = vcmp.gt.s32.totalorder %v2310_v20, %v821_v32 }
 0x2a0   : > { %v452_v35 = vadd.f32 %v451_v33, %v447_v34 }
 0x2a2   : > { %v467_v36 = vsel %vm459_vm3, %v452_v35, %v449_v30  ;;  %v2316_v37 = vsel %vm459_vm3, %v452_v35, 0.0 }
 0x2a3   : > { %475 = vrot.lane.b32.xlu0 %v467_v36, %s2054_s22 }
 0x315   : > { %v476_v38 = vpop.permute.xlu0 %475 }
 0x316   : > { %1652 = vmatmul.mubr.msk.f32.vlgmr.msra.gmra.mrb[0].mxu1 %vm322_vm0, %v476_v38  ;;  %v1558_v38 = vld [vmem:[%s1435_s26 + $0x18] sm:$0xff]  ;;  %s1446_s26 = scalar_lea.vmem %s2251_s7, %s1566_s13 [#allocation3] }
 0x317   : > { %1740 = vmatpush3.bf16.msra.mxu1 %v2276_v5  ;;  %1673 = vmatprep.mubr.msk.f32.mxu1 %vm2049_vm1, %v2050_v1 }
 0x318   : > { %1741 = vmatprep.subr.bf16.mxu1 %v2048_v0 }
 0x31b   : > { %1743 = vmatpush3.bf16.msra.mxu1 %v2280_v8 }
 0x31c   : > { %1750 = vmatprep.subr.bf16.mxu1 %v2048_v0 }
 0x3e9   : > { %v545_v40 = vpop.f32.mrb[0].mxu1 }
 0x3ea   : > { %v556_v41 = vadd.f32 %v545_v40, %v2298_v11  ;;  %v1653_v42 = vpop.f32.mrb[1].mxu1  ;;  %v549_v45 = vadd.f32 %v1546_v44, %v545_v40 }
 0x3ec   : > { %558 = vrot.lane.b32.xlu1 %v556_v41, %s2051_s24  ;;  %v1548_v46 = vmul.f32 -1.442695, %v549_v45 }
 0x3ee   : > { %1854 = vpow2.f32 %v1548_v46 }
 0x3f0   : > { %580 = vperm.xlu1 %1846, %v578_v43  }
 0x3f8   : > { %v1855_v47 = vpop.eup %1854 }
 0x3f9   : > { %v553_v48 = vadd.f32 1.0, %v1855_v47 }
 0x3fb   : > { %1856 = vrcp.f32 %v553_v48 }
 0x405   : > { %v1857_v49 = vpop.eup %1856 }
 0x406   : > { %v568_v55 = vsub.f32 1.0, %v1857_v49  ;;  %v574_v58 = vmul.f32 %v1857_v49, %v467_v36 }
 0x45e   : > { %v559_v50 = vpop.permute.xlu1 %558 }
 0x45f   : > { %v561_v51 = vmul.f32 %v1857_v49, %v559_v50 }
 0x461   : > { %563 = vrot.lane.b32.xlu0 %v561_v51, %s2051_s24 }
 0x46f   : > { %v581_v57 = vpop.permute.xlu1 %580 }
 0x470   : > { %vm582_vm5 = vcmp.eq.s32.totalorder %v581_v57, 1 }
 0x4d3   : > { %v564_v52 = vpop.permute.xlu0 %563 }
 0x4d4   : > { %v566_v53 = vadd.f32 %v1546_v44, %v564_v52 }
 0x4d6   : > { %1858 = vtanh.f32 %v566_v53 }
 0x4e0   : > { %v1859_v54 = vpop.eup %1858 }
 0x4e1   : > { %570 = vrot.lane.b32.xlu0 %v1859_v54, %s2054_s22 }
 0x553   : > { %v571_v56 = vpop.permute.xlu0 %570 }
 0x554   : > { %v573_v59 = vmul.f32 %v571_v56, %v568_v55 }
 0x556   : > { %v575_v60 = vadd.f32 %v574_v58, %v573_v59  ;;  %v943_v58 = vstv %s836_s8  ;;  %s1081_s8 = smul.u32 4294967291, %s2034_s18 }
 0x557   : > { %vm944_vm10 = vcmp.gt.s32.totalorder %v2310_v20, %v943_v58 }
 0x558   : > { %v590_v61 = vsel %vm582_vm5, %v575_v60, %v467_v36  ;;  %v2337_v62 = vsel %vm582_vm5, %v575_v60, 0.0  ;;  %v823_v36 = vsel %vm822_vm8, 1, %v2052_v10 }
 0x559   : > { %598 = vrot.lane.b32.xlu1 %v590_v61, %s2054_s22 }
 0x5cb   : > { %v599_v63 = vpop.permute.xlu1 %598 }
 0x5cc   : > { %1663 = vmatmul.mubr.msk.f32.vlgmr.msra.gmra.mrb[2].mxu0 %vm322_vm0, %v599_v63  ;;  %v945_v63 = vsel %vm944_vm10, 1, %v2052_v10 }
 0x5cd   : > { %1746 = vmatpush3.bf16.msra.mxu0 %v2276_v5  ;;  %1684 = vmatprep.mubr.msk.f32.mxu0 %vm2049_vm1, %v2050_v1 }
 0x5ce   : > { %1747 = vmatprep.subr.bf16.mxu0 %v2048_v0 }
 0x5d1   : > { %1749 = vmatpush3.bf16.msra.mxu0 %v2280_v8 }
 0x5d2   : > { %1756 = vmatprep.subr.bf16.mxu0 %v2048_v0 }
 0x69f   : > { %v668_v2 = vpop.f32.mrb[2].mxu0 }
 0x6a0   : > { %v679_v3 = vadd.f32 %v668_v2, %v2298_v11  ;;  %v1664_v4 = vpop.f32.mrb[3].mxu0  ;;  %v672_v7 = vadd.f32 %v1552_v6, %v668_v2  ;;  %v840_v2 = vld [vmem:[%s839_s9] sm:$0xff]  ;;  %s1082_s9 = sadd.s32 6, %s1081_s8 }
 0x6a2   : > { %681 = vrot.lane.b32.xlu0 %v679_v3, %s2051_s24  ;;  %v1554_v9 = vmul.f32 -1.442695, %v672_v7 }
 0x6a4   : > { %1860 = vpow2.f32 %v1554_v9 }
 0x6a6   : > { %703 = vperm.xlu0 %1847, %v701_v15  }
 0x6ae   : > { %v1861_v12 = vpop.eup %1860 }
 0x6af   : > { %v676_v13 = vadd.f32 1.0, %v1861_v12 }
 0x6b1   : > { %1862 = vrcp.f32 %v676_v13 }
 0x6bb   : > { %v1863_v16 = vpop.eup %1862 }
 0x6bc   : > { %v691_v23 = vsub.f32 1.0, %v1863_v16  ;;  %v697_v26 = vmul.f32 %v1863_v16, %v590_v61 }
 0x714   : > { %v682_v17 = vpop.permute.xlu0 %681 }
 0x715   : > { %v684_v18 = vmul.f32 %v1863_v16, %v682_v17 }
 0x717   : > { %686 = vrot.lane.b32.xlu1 %v684_v18, %s2051_s24 }
 0x725   : > { %v704_v24 = vpop.permute.xlu0 %703 }
 0x726   : > { %vm705_vm7 = vcmp.eq.s32.totalorder %v704_v24, 1 }
 0x789   : > { %v687_v19 = vpop.permute.xlu1 %686 }
 0x78a   : > { %v689_v21 = vadd.f32 %v1552_v6, %v687_v19 }
 0x78c   : > { %1864 = vtanh.f32 %v689_v21 }
 0x796   : > { %v1865_v22 = vpop.eup %1864 }
 0x797   : > { %693 = vrot.lane.b32.xlu1 %v1865_v22, %s2054_s22 }
 0x809   : > { %v694_v25 = vpop.permute.xlu1 %693 }
 0x80a   : > { %v696_v27 = vmul.f32 %v694_v25, %v691_v23 }
 0x80c   : > { %v698_v28 = vadd.f32 %v697_v26, %v696_v27  ;;  %v1066_v27 = vstv %s959_s12  ;;  %s1454_s12 = scalar_lea.vmem %s2251_s7, %s1572_s14 [#allocation3] }
 0x80d   : > { %vm1067_vm12 = vcmp.gt.s32.totalorder %v2310_v20, %v1066_v27 }
 0x80e   : > { %v2358_v29 = vsel %vm705_vm7, %v698_v28, 0.0  ;;  %v713_v30 = vsel %vm705_vm7, %v698_v28, %v590_v61 }
 0x80f   : > { %720 = vrot.lane.b32.xlu1 %v713_v30, %s2054_s22 }
 0x881   : > { %v721_v31 = vpop.permute.xlu1 %720 }
 0x882   : > { %1674 = vmatmul.mubr.msk.f32.vlgmr.msra.gmra.mrb[2].mxu1 %vm322_vm0, %v721_v31 }
 0x883   : > { %1752 = vmatpush3.bf16.msra.mxu1 %v2276_v5  ;;  %1695 = vmatprep.mubr.msk.f32.mxu1 %vm2049_vm1, %v2050_v1 }
 0x884   : > { %1753 = vmatprep.subr.bf16.mxu1 %v2048_v0 }
 0x887   : > { %1755 = vmatpush3.bf16.msra.mxu1 %v2280_v8 }
 0x888   : > { %1762 = vmatprep.subr.bf16.mxu1 %v2048_v0 }
 0x955   : > { %v790_v33 = vpop.f32.mrb[2].mxu1 }
 0x956   : > { %v801_v34 = vadd.f32 %v790_v33, %v2298_v11  ;;  %v1675_v35 = vpop.f32.mrb[3].mxu1  ;;  %v794_v39 = vadd.f32 %v1558_v38, %v790_v33 }
 0x958   : > { %803 = vrot.lane.b32.xlu0 %v801_v34, %s2051_s24  ;;  %v1560_v40 = vmul.f32 -1.442695, %v794_v39 }
 0x95a   : > { %1866 = vpow2.f32 %v1560_v40 }
 0x95c   : > { %825 = vperm.xlu0 %1847, %v823_v36  }
 0x964   : > { %v1867_v41 = vpop.eup %1866 }
 0x965   : > { %v798_v42 = vadd.f32 1.0, %v1867_v41 }
 0x967   : > { %1868 = vrcp.f32 %v798_v42 }
 0x971   : > { %v1869_v43 = vpop.eup %1868 }
 0x972   : > { %v813_v49 = vsub.f32 1.0, %v1869_v43  ;;  %v819_v52 = vmul.f32 %v1869_v43, %v713_v30 }
 0x9ca   : > { %v804_v44 = vpop.permute.xlu0 %803 }
 0x9cb   : > { %v806_v45 = vmul.f32 %v1869_v43, %v804_v44 }
 0x9cd   : > { %808 = vrot.lane.b32.xlu1 %v806_v45, %s2051_s24 }
 0x9db   : > { %v826_v51 = vpop.permute.xlu0 %825 }
 0x9dc   : > { %vm827_vm9 = vcmp.eq.s32.totalorder %v826_v51, 1 }
 0xa3f   : > { %v809_v46 = vpop.permute.xlu1 %808 }
 0xa40   : > { %v811_v47 = vadd.f32 %v1558_v38, %v809_v46 }
 0xa42   : > { %1870 = vtanh.f32 %v811_v47 }
 0xa4c   : > { %v1871_v48 = vpop.eup %1870 }
 0xa4d   : > { %815 = vrot.lane.b32.xlu1 %v1871_v48, %s2054_s22 }
 0xabf   : > { %v816_v50 = vpop.permute.xlu1 %815 }
 0xac0   : > { %v818_v53 = vmul.f32 %v816_v50, %v813_v49  ;;  %v1189_v50 = vstv %s1082_s9  ;;  %s1578_s9 = smul.u32 4294967240, %s2034_s18 }
 0xac1   : > { %vm1190_vm14 = vcmp.gt.s32.totalorder %v2310_v20, %v1189_v50 }
 0xac2   : > { %v820_v54 = vadd.f32 %v819_v52, %v818_v53 }
 0xac4   : > { %v835_v55 = vsel %vm827_vm9, %v820_v54, %v713_v30  ;;  %v2379_v56 = vsel %vm827_vm9, %v820_v54, 0.0  ;;  %v1191_v54 = vsel %vm1190_vm14, 1, %v2052_v10 }
 0xac5   : > { %842 = vrot.lane.b32.xlu0 %v835_v55, %s2054_s22 }
 0xb37   : > { %v843_v57 = vpop.permute.xlu0 %842 }
 0xb38   : > { %1685 = vmatmul.mubr.msk.f32.vlgmr.msra.gmra.mrb[4].mxu0 %vm322_vm0, %v843_v57 }
 0xb39   : > { %1758 = vmatpush3.bf16.msra.mxu0 %v2276_v5  ;;  %1706 = vmatprep.mubr.msk.f32.mxu0 %vm2049_vm1, %v2050_v1 }
 0xb3a   : > { %1759 = vmatprep.subr.bf16.mxu0 %v2048_v0 }
 0xb3d   : > { %1761 = vmatpush3.bf16.msra.mxu0 %v2280_v8 }
 0xc0b   : > { %v912_v59 = vpop.f32.mrb[4].mxu0 }
 0xc0c   : > { %v923_v60 = vadd.f32 %v912_v59, %v2298_v11  ;;  %v1686_v61 = vpop.f32.mrb[5].mxu0  ;;  %v916_v3 = vadd.f32 %v912_v59, %v840_v2 }
 0xc0e   : > { %925 = vrot.lane.b32.xlu1 %v923_v60, %s2051_s24  ;;  %v1565_v4 = vmul.f32 -1.442695, %v916_v3 }
 0xc10   : > { %1872 = vpow2.f32 %v1565_v4 }
 0xc12   : > { %947 = vperm.xlu1 %1846, %v945_v63  }
 0xc1a   : > { %v1873_v6 = vpop.eup %1872 }
 0xc1b   : > { %v920_v7 = vadd.f32 1.0, %v1873_v6 }
 0xc1d   : > { %1874 = vrcp.f32 %v920_v7 }
 0xc27   : > { %v1875_v9 = vpop.eup %1874 }
 0xc28   : > { %v935_v17 = vsub.f32 1.0, %v1875_v9  ;;  %v941_v21 = vmul.f32 %v1875_v9, %v835_v55 }
 0xc80   : > { %v926_v12 = vpop.permute.xlu1 %925 }
 0xc81   : > { %v928_v13 = vmul.f32 %v1875_v9, %v926_v12 }
 0xc83   : > { %930 = vrot.lane.b32.xlu0 %v928_v13, %s2051_s24 }
 0xc91   : > { %v948_v19 = vpop.permute.xlu1 %947 }
 0xc92   : > { %vm949_vm11 = vcmp.eq.s32.totalorder %v948_v19, 1 }
 0xcf5   : > { %v931_v14 = vpop.permute.xlu0 %930 }
 0xcf6   : > { %v933_v15 = vadd.f32 %v931_v14, %v840_v2 }
 0xcf8   : > { %1876 = vtanh.f32 %v933_v15 }
 0xd02   : > { %v1877_v16 = vpop.eup %1876 }
 0xd03   : > { %937 = vrot.lane.b32.xlu0 %v1877_v16, %s2054_s22 }
 0xd75   : > { %v938_v18 = vpop.permute.xlu0 %937 }
 0xd76   : > { %v940_v22 = vmul.f32 %v938_v18, %v935_v17 }
 0xd78   : > { %v942_v23 = vadd.f32 %v941_v21, %v940_v22 }
 0xd7a   : > { %v957_v24 = vsel %vm949_vm11, %v942_v23, %v835_v55  ;;  %v2399_v25 = vsel %vm949_vm11, %v942_v23, 0.0  ;;  %v1573_v55 = vld [vmem:[%s1454_s12 + $0x30] sm:$0xff]  ;;  %s1462_s12 = scalar_lea.vmem %s2251_s7, %s1578_s9 [#allocation3] }
 0xd7b   : > { %965 = vrot.lane.b32.xlu1 %v957_v24, %s2054_s22 }
 0xded   : > { %v966_v26 = vpop.permute.xlu1 %965 }
 0xdee   : > { %1696 = vmatmul.mubr.msk.f32.vlgmr.msra.gmra.mrb[4].mxu1 %vm322_vm0, %v966_v26 }
 0xdef   : > { %1764 = vmatpush3.bf16.msra.mxu1 %v2276_v5  ;;  %1717 = vmatprep.mubr.msk.f32.mxu1 %vm2049_vm1, %v2050_v1  ;;  %v1068_v5 = vsel %vm1067_vm12, 1, %v2052_v10 }
 0xdf0   : > { %1765 = vmatprep.subr.bf16.mxu1 %v2048_v0  ;;  %v1567_v0 = vld [vmem:[%s1446_s26 + $0x28] sm:$0xff]  ;;  %s1204_s26 = smul.u32 4294967289, %s2034_s18 }
 0xdf2   : > { %s1205_s8 = sadd.s32 7, %s1204_s26  ;;  %s2455_s26 = scalar_lea.vmem [#allocation8], %s1538_s6 }
 0xdf3   : > { %1767 = vmatpush3.bf16.msra.mxu1 %v2280_v8  ;;  %v1312_v19 = vstv %s1205_s8  ;;  %s465_s8 = scalar_lea.vmem %s2455_s26, %s1541_s21 [#allocation8]  ;;  %s1424_s6 = scalar_lea.vmem %s2455_s26, %s1545_s27 [#allocation8] }
 0xdf4   : > { %vm1313_vm1 = vcmp.gt.s32.totalorder %v2310_v20, %v1312_v19  ;;  %s1432_s7 = scalar_lea.vmem %s2455_s26, %s1551_s10 [#allocation8]  ;;  %s955_s21 = scalar_lea.vmem %s2455_s26, %s2393_s11 [#allocation8] }
 0xdf5   : > { %s1450_s27 = scalar_lea.vmem %s2455_s26, %s1566_s13 [#allocation8]  ;;  %s1458_s10 = scalar_lea.vmem %s2455_s26, %s1572_s14 [#allocation8] }
 0xdf6   : > { %s1466_s11 = scalar_lea.vmem %s2455_s26, %s1578_s9 [#allocation8]  ;;  %s1333_s14 = scalar_lea.sflag [#allocation5], %s2245_s25 }
 0xec1   : > { %v1035_v28 = vpop.f32.mrb[4].mxu1 }
 0xec2   : > { %v1046_v30 = vadd.f32 %v1035_v28, %v2298_v11  ;;  %v1697_v31 = vpop.f32.mrb[5].mxu1  ;;  %v1039_v1 = vadd.f32 %v1567_v0, %v1035_v28 }
 0xec4   : > { %1048 = vrot.lane.b32.xlu0 %v1046_v30, %s2051_s24  ;;  %v1569_v8 = vmul.f32 -1.442695, %v1039_v1 }
 0xec6   : > { %1878 = vpow2.f32 %v1569_v8 }
 0xec8   : > { %1070 = vperm.xlu0 %1847, %v1068_v5  }
 0xed0   : > { %v1879_v32 = vpop.eup %1878 }
 0xed1   : > { %v1043_v33 = vadd.f32 1.0, %v1879_v32 }
 0xed3   : > { %1880 = vrcp.f32 %v1043_v33 }
 0xedd   : > { %v1881_v34 = vpop.eup %1880 }
 0xede   : > { %v1058_v41 = vsub.f32 1.0, %v1881_v34  ;;  %v1064_v44 = vmul.f32 %v1881_v34, %v957_v24 }
 0xf36   : > { %v1049_v35 = vpop.permute.xlu0 %1048 }
 0xf37   : > { %v1051_v36 = vmul.f32 %v1881_v34, %v1049_v35 }
 0xf39   : > { %1053 = vrot.lane.b32.xlu1 %v1051_v36, %s2051_s24 }
 0xf47   : > { %v1071_v43 = vpop.permute.xlu0 %1070 }
 0xf48   : > { %vm1072_vm13 = vcmp.eq.s32.totalorder %v1071_v43, 1 }
 0xfab   : > { %v1054_v38 = vpop.permute.xlu1 %1053 }
 0xfac   : > { %v1056_v39 = vadd.f32 %v1567_v0, %v1054_v38 }
 0xfae   : > { %1882 = vtanh.f32 %v1056_v39 }
 0xfb8   : > { %v1883_v40 = vpop.eup %1882 }
 0xfb9   : > { %1060 = vrot.lane.b32.xlu1 %v1883_v40, %s2054_s22 }
0x102b   : > { %v1061_v42 = vpop.permute.xlu1 %1060 }
0x102c   : > { %v1063_v45 = vmul.f32 %v1061_v42, %v1058_v41 }
0x102e   : > { %v1065_v46 = vadd.f32 %v1064_v44, %v1063_v45 }
0x1030   : > { %v1080_v47 = vsel %vm1072_vm13, %v1065_v46, %v957_v24  ;;  %v2419_v48 = vsel %vm1072_vm13, %v1065_v46, 0.0  ;;  %v1314_v24 = vsel %vm1313_vm1, 1, %v2052_v10 }
0x1031   : > { %1088 = vrot.lane.b32.xlu0 %v1080_v47, %s2054_s22 }
0x10a3   : > { %v1089_v49 = vpop.permute.xlu0 %1088 }
0x10a4   : > { %1707 = vmatmul.mubr.msk.f32.vlgmr.msra.gmra.mrb[6].mxu0 %vm322_vm0, %v1089_v49 }
0x1177   : > { %v1158_v51 = vpop.f32.mrb[6].mxu0 }
0x1178   : > { %v1169_v52 = vadd.f32 %v1158_v51, %v2298_v11  ;;  %v1708_v53 = vpop.f32.mrb[7].mxu0  ;;  %v1162_v57 = vadd.f32 %v1573_v55, %v1158_v51 }
0x117a   : > { %1171 = vrot.lane.b32.xlu1 %v1169_v52, %s2051_s24  ;;  %v1575_v58 = vmul.f32 -1.442695, %v1162_v57 }
0x117c   : > { %1884 = vpow2.f32 %v1575_v58 }
0x117e   : > { %1193 = vperm.xlu1 %1846, %v1191_v54  }
0x1186   : > { %v1885_v59 = vpop.eup %1884 }
0x1187   : > { %v1166_v60 = vadd.f32 1.0, %v1885_v59 }
0x1189   : > { %1886 = vrcp.f32 %v1166_v60 }
0x1193   : > { %v1887_v61 = vpop.eup %1886 }
0x1194   : > { %v1181_v7 = vsub.f32 1.0, %v1887_v61  ;;  %v1187_v13 = vmul.f32 %v1887_v61, %v1080_v47 }
0x11ec   : > { %v1172_v63 = vpop.permute.xlu1 %1171 }
0x11ed   : > { %v1174_v2 = vmul.f32 %v1887_v61, %v1172_v63 }
0x11ef   : > { %1176 = vrot.lane.b32.xlu0 %v1174_v2, %s2051_s24 }
0x11fd   : > { %v1194_v12 = vpop.permute.xlu1 %1193 }
0x11fe   : > { %vm1195_vm15 = vcmp.eq.s32.totalorder %v1194_v12, 1 }
0x1261   : > { %v1177_v3 = vpop.permute.xlu0 %1176 }
0x1262   : > { %v1179_v4 = vadd.f32 %v1573_v55, %v1177_v3 }
0x1264   : > { %1888 = vtanh.f32 %v1179_v4 }
0x126e   : > { %v1889_v6 = vpop.eup %1888 }
0x126f   : > { %1183 = vrot.lane.b32.xlu0 %v1889_v6, %s2054_s22 }
0x12e1   : > { %v1184_v9 = vpop.permute.xlu0 %1183 }
0x12e2   : > { %v1186_v14 = vmul.f32 %v1184_v9, %v1181_v7 }
0x12e4   : > { %v1188_v15 = vadd.f32 %v1187_v13, %v1186_v14 }
0x12e6   : > { %v1203_v16 = vsel %vm1195_vm15, %v1188_v15, %v1080_v47  ;;  %v1196_v17 = vsel %vm1195_vm15, %v1188_v15, 0.0 }
0x12e7   : > { %1211 = vrot.lane.b32.xlu1 %v1203_v16, %s2054_s22 }
0x1359   : > { %v1212_v18 = vpop.permute.xlu1 %1211 }
0x135a   : > { %1718 = vmatmul.mubr.msk.f32.vlgmr.msra.gmra.mrb[6].mxu1 %vm322_vm0, %v1212_v18 }
0x142d   : > { %v1281_v21 = vpop.f32.mrb[6].mxu1 }
0x142e   : > { %v1292_v22 = vadd.f32 %v1281_v21, %v2298_v11  ;;  %v1719_v23 = vpop.f32.mrb[7].mxu1  ;;  %v1579_v11 = vld [vmem:[%s1462_s12 + $0x38] sm:$0xff] }
0x142f   : > { %v1285_v20 = vadd.f32 %v1579_v11, %v1281_v21 }
0x1430   : > { %1294 = vrot.lane.b32.xlu0 %v1292_v22, %s2051_s24 }
0x1431   : > { %v1581_v10 = vmul.f32 -1.442695, %v1285_v20 }
0x1433   : > { %1890 = vpow2.f32 %v1581_v10 }
0x1434   : > { %1316 = vperm.xlu0 %1847, %v1314_v24  }
0x1438   : > { %462 = vrot.lane.b32.xlu0 %v2316_v37, %s2054_s22 }
0x143c   : > { %708 = vrot.lane.b32.xlu0 %v2358_v29, %s2054_s22 }
0x143d   : > { %v1891_v26 = vpop.eup %1890 }
0x143e   : > { %v1289_v27 = vadd.f32 1.0, %v1891_v26 }
0x1440   : > { %952 = vrot.lane.b32.xlu0 %v2399_v25, %s2054_s22  ;;  %1892 = vrcp.f32 %v1289_v27 }
0x1444   : > { %1198 = vrot.lane.b32.xlu0 %v1196_v17, %s2054_s22 }
0x144a   : > { %v1893_v37 = vpop.eup %1892 }
0x144b   : > { %v1304_v1 = vsub.f32 1.0, %v1893_v37  ;;  %v1310_v33 = vmul.f32 %v1893_v37, %v1203_v16 }
0x14a2   : > { %v1295_v28 = vpop.permute.xlu0 %1294 }
0x14a3   : > { %v1297_v29 = vmul.f32 %v1893_v37, %v1295_v28 }
0x14a5   : > { %1299 = vrot.lane.b32.xlu1 %v1297_v29, %s2051_s24  ;;  %s1438_s24 = scalar_lea.vmem %s2455_s26, %s1557_s5 [#allocation8]  ;;  %s1591_s5 = sshll.u32 %s2034_s18, 10 }
0x14a6   : > { %s2501_s13 = scalar_lea.hbm %s2558_s4, %s1591_s5  ;;  %s2055_s18 = smov [#allocation8]  }
0x14a7   : > { %s1960_s9 = sshll.u32 %s2055_s18, 4  ;;  %s1961_s9 = int_to_ptr.vmem [resolvable:$false] %s1960_s9 }
0x14b3   : > { %v1317_v25 = vpop.permute.xlu0 %1316 }
0x14b4   : > { %vm1318_vm2 = vcmp.eq.s32.totalorder %v1317_v25, 1 }
0x14b7   : > { %v463_v30 = vpop.permute.xlu0 %462 }
0x14b8   : > { %466 = vst.msk [vmem:[%s465_s8] sm:$0xff] %vm322_vm0, %v463_v30 }
0x14bb   : > { %v709_v32 = vpop.permute.xlu0 %708 }
0x14bf   : > { %v953_v38 = vpop.permute.xlu0 %952 }
0x14c3   : > { %v1199_v41 = vpop.permute.xlu0 %1198 }
0x1517   : > { %v1300_v31 = vpop.permute.xlu1 %1299 }
0x1518   : > { %v1302_v5 = vadd.f32 %v1579_v11, %v1300_v31 }
0x151a   : > { %1894 = vtanh.f32 %v1302_v5 }
0x1524   : > { %v1895_v0 = vpop.eup %1894 }
0x1525   : > { %1306 = vrot.lane.b32.xlu1 %v1895_v0, %s2054_s22 }
0x1529   : > { %585 = vrot.lane.b32.xlu1 %v2337_v62, %s2054_s22 }
0x152d   : > { %830 = vrot.lane.b32.xlu1 %v2379_v56, %s2054_s22 }
0x1531   : > { %1075 = vrot.lane.b32.xlu1 %v2419_v48, %s2054_s22 }
0x1597   : > { %v1307_v8 = vpop.permute.xlu1 %1306 }
0x1598   : > { %v1309_v34 = vmul.f32 %v1307_v8, %v1304_v1 }
0x159a   : > { %v1311_v62 = vadd.f32 %v1310_v33, %v1309_v34 }
0x159b   : > { %v586_v56 = vpop.permute.xlu1 %585 }
0x159c   : > { %1550 = vst.msk [vmem:[%s1424_s6 + $0x8] sm:$0xff] %vm322_vm0, %v586_v56  ;;  %v1319_v35 = vsel %vm1318_vm2, %v1311_v62, 0.0  ;;  %v1326_v36 = vsel %vm1318_vm2, %v1311_v62, %v1203_v16 }
0x159d   : > { %1556 = vst.msk [vmem:[%s1432_s7 + $0x10] sm:$0xff] %vm322_vm0, %v709_v32  ;;  %1321 = vrot.lane.b32.xlu1 %v1319_v35, %s2054_s22  ;;  %1328 = vrot.lane.b32.xlu0 %v1326_v36, %s2054_s22  ;;  %s1352_s22 = sshll.u32 %s2455_s26, 4  ;;  %s1962_s26 = scalar_lea.vmem %s1961_s9, 2048  ;;  %s2503_s22 = int_to_ptr.vmem [resolvable:$true] %s1352_s22 }
0x159e   : > { %s1956_s6 = scalar_lea.vmem %s2503_s22, 1024  ;;  %p1963_p10 = scmp.lt.s32.totalorder %s2503_s22, %s1961_s9 }
0x159f   : > { %v831_v39 = vpop.permute.xlu1 %830  ;;  %p1957_p3 = scmp.ne.s32.totalorder %s2503_s22, %s1956_s6  ;;  %p1964_p9 = scmp.lt.s32.totalorder %s1962_s26, %s1956_s6 }
0x15a0   : > { %1562 = vst.msk [vmem:[%s1438_s24 + $0x18] sm:$0xff] %vm322_vm0, %v831_v39 }
0x15a1   : > { %956 = vst.msk [vmem:[%s955_s21] sm:$0xff] %vm322_vm0, %v953_v38  ;;  %p1958_p13 = pnand %p1957_p3, %p2571_p12  ;;  %p1965_p11 = por %p1964_p9, %p1963_p10 }
0x15a3   : > { %v1076_v40 = vpop.permute.xlu1 %1075  ;;  %p1959_p7 = pneg %p1958_p13 }
0x15a4   : > { %1571 = vst.msk [vmem:[%s1450_s27 + $0x28] sm:$0xff] %vm322_vm0, %v1076_v40 }
0x15a5   : > { %1577 = vst.msk [vmem:[%s1458_s10 + $0x30] sm:$0xff] %vm322_vm0, %v1199_v41  ;;  %p1966_p1 = pnand %p1965_p11, %p1959_p7 }
0x160f   : > { %v1322_v42 = vpop.permute.xlu1 %1321  ;;  %v1329_v43 = vpop.permute.xlu0 %1328 }
0x1610   : > { %1583 = vst.msk [vmem:[%s1466_s11 + $0x38] sm:$0xff] %vm322_vm0, %v1322_v42  ;;  %1331 = vst.msk [vmem:[#allocation2] sm:$0xff] %vm322_vm0, %v1329_v43 }
0x1611   : > { %1969 = shalt.err (!%p1966_p1)
}
0x1612   : > { %s1970_s7 = scalar_lea.hbm %s2501_s13, 1024  ;;  %s1974_s27 = scalar_lea.hbm %s2558_s4, 2048 }
0x1613   : > { %p1971_p6 = scmp.ne.s32.totalorder %s2501_s13, %s1970_s7  ;;  %p1975_p4 = scmp.lt.u32.totalorder %s2501_s13, %s2558_s4 }
0x1614   : > { %p1976_p8 = scmp.lt.u32.totalorder %s1974_s27, %s1970_s7  ;;  %p1978_p3 = scmp.lt.u32.totalorder %s1970_s7, %s2501_s13 }
0x1615   : > { %p1972_p2 = pnand %p1971_p6, %p2571_p12 }
0x1616   : > { %p1977_p0 = por %p1976_p8, %p1975_p4 }
0x1617   : > { %p1973_p5 = pneg %p1972_p2 }
0x1618   : > { %p1979_p13 = por %p1978_p3, %p1977_p0 }
0x161a   : > { %p1980_p7 = pnand %p1979_p13, %p1973_p5 }
0x161c   : > { %1983 = shalt.err (!%p1980_p7)
}
0x161d   : > { %s2056_s11 = smov 128   ;;  %s2057_s12 = smov 8  }
0x161e   : > { %1772 = dma.vmem_to_hbm [thread:$0]  (%p2571_p12), %s2503_s22, 1024, %s2501_s13, %s1333_s14, %s2056_s11, %s2056_s11, %s2057_s12  }
0x161f PF: > { %s1367_s8 = sand.u32 1, %s2022_s15   ;;  %p2572_p10 = scmp.ne.s32.totalorder %s2565_s30, 0 }
0x1620   : > { %p2573_p9 = scmp.ge.s32.totalorder %s2042_s20, 2  ;;  %s1368_s6 = scalar_lea.sflag [#allocation5], %s1367_s8 }
0x1622   : > { %p1782_p11 = pnand %p2573_p9, %p2572_p10 }
0x1624   : > { %2017 = dma.done.wait (!%p1782_p11), %s1368_s6, 1024  }
0x1625   : > { %2019 = vsyncadd (!%p1782_p11), %s1368_s6, 4294966272  ;;  %s23_s20 = sadd.s32 1, %s2042_s20   ;;  %s2574_s15 = smov %s2026_s16 }
0x1626   : > { %p20_p1 = scmp.ge.s32.totalorder %s23_s20, 4   ;;  %s2575_s16 = smov %s2030_s17 }
0x1627   : > { %s2576_s17 = smov %s2139_s29  ;;  %s2577_s18 = smov %s2038_s19 }
0x1628   : > { %s2578_s19 = smov %s2580_s23  ;;  %22 = sbr.rel (!%p20_p1) target bundleno = 8 (0x8), region = 117 }
0x162f   :  { %1373 = vsyncpa [#allocation4], 1 }
0x1630   :  { %1375 = vsyncpa [#allocation4 + $0x1], 1 }
0x1631   :  { %1376 = vsyncpa [#allocation7], 1 }
0x1632   :  { %1378 = vsyncpa [#allocation7 + $0x1], 1 }
0x1633   :  { %1379 = vsyncpa [#allocation5], 1 }
0x1634   :  { %1381 = vsyncpa [#allocation5 + $0x1], 1 }

</bundles_post_ra>
